<compile_context>
chip_gen: v7x
topology: tpu7x:2x2x1
jax: 0.10.0
libtpu: 0.0.40
codegen_flags: <defaults>
</compile_context>

<pallas_src>
import jax
import jax.numpy as jnp
from jax.experimental import pallas as pl
from jax.experimental.pallas import tpu as pltpu


def _make_lstm3_kernel(num_layers, Bp, T, H):
    """Builds the Pallas kernel body (closes over static shapes/layer count)."""

    def kernel(*refs):
        idx = 0
        x_ref = refs[idx]; idx += 1                       # (T*Bp, D0p)  bf16
        layer_refs = []
        for _ in range(num_layers):
            w_ih_t_ref = refs[idx]                        # (D_l_pad, 4H) bf16, pre-transposed
            w_hh_t_ref = refs[idx + 1]                    # (H, 4H)       bf16, pre-transposed
            b_ref = refs[idx + 2]                         # (1, 4H)       f32, b_ih + b_hh
            layer_refs.append((w_ih_t_ref, w_hh_t_ref, b_ref))
            idx += 3
        gamma_ref = refs[idx]; beta_ref = refs[idx + 1]; idx += 2   # (1, H) f32 each
        out_ref = refs[idx]                               # (Bp, T*H) f32, lane-dense

        hs = []                                           # per-step h_t of current layer
        for layer in range(num_layers):
            w_ih_t_ref, w_hh_t_ref, b_ref = layer_refs[layer]
            w_hh_t = w_hh_t_ref[...]                      # read once per layer (bf16)
            b = b_ref[...]                                # (1, 4H) f32

            # --- hoisted input->hidden projection for all timesteps (one matmul) ---
            if layer == 0:
                src = x_ref[...]                          # already bf16, padded dim
            else:
                src = jnp.concatenate(hs, axis=0).astype(jnp.bfloat16)  # (T*Bp, H)
            gih = jnp.dot(src, w_ih_t_ref[...],
                          preferred_element_type=jnp.float32) + b       # (T*Bp, 4H) f32

            # --- serial recurrence, fully unrolled (T small & static) -------------
            h = jnp.zeros((Bp, H), jnp.float32)
            c = jnp.zeros((Bp, H), jnp.float32)
            hs = []
            for t in range(T):
                gates = gih[t * Bp:(t + 1) * Bp, :] + jnp.dot(
                    h.astype(jnp.bfloat16), w_hh_t,
                    preferred_element_type=jnp.float32)   # (Bp, 4H) f32
                # wrapper-reordered gate columns: [i, f, o, g]
                sig = jax.nn.sigmoid(gates[:, 0:3 * H])   # one EUP issue for i,f,o
                i_g = sig[:, 0:H]
                f_g = sig[:, H:2 * H]
                o_g = sig[:, 2 * H:3 * H]
                g_g = jnp.tanh(gates[:, 3 * H:4 * H])
                c = f_g * c + i_g * g_g
                h = o_g * jnp.tanh(c)
                hs.append(h)

        # --- fused LayerNorm over the stacked (T*Bp, H) slab (register value) ------
        y = jnp.concatenate(hs, axis=0)                   # (T*Bp, H) f32
        mean = jnp.mean(y, axis=-1, keepdims=True)
        diff = y - mean
        var = jnp.mean(diff * diff, axis=-1, keepdims=True)
        yn = diff * jax.lax.rsqrt(var + 1e-5) * gamma_ref[...] + beta_ref[...]

        # --- single lane-dense store: (Bp, T*H) == batch-first (Bp, T, H) flat -----
        out_ref[...] = jnp.concatenate(
            [yn[t * Bp:(t + 1) * Bp, :] for t in range(T)], axis=1
        ).astype(out_ref.dtype)

    return kernel


def lstm3_forward(x, layer_params, gamma, beta):
    """x: (B, T, D_in) batch-first float32.  Returns (B, T, H) float32."""
    B, T, D_in = x.shape
    H = layer_params[0][1].shape[1]          # w_hh: (4H, H)
    num_layers = len(layer_params)

    # Pad batch to a multiple of 8 sublanes; pad layer-0 contraction dim to a
    # multiple of 8 (30 -> 32).  All layout work stays in XLA.
    Bp = max(8, -(-B // 8) * 8)
    D0p = -(-D_in // 8) * 8

    xf = x.astype(jnp.float32)
    if Bp != B:
        xf = jnp.pad(xf, ((0, Bp - B), (0, 0), (0, 0)))
    x2d = jnp.transpose(xf, (1, 0, 2)).reshape(T * Bp, D_in)   # time-major, 2-D
    if D0p != D_in:
        x2d = jnp.pad(x2d, ((0, 0), (0, D0p - D_in)))
    x2d = x2d.astype(jnp.bfloat16)                             # MXU operand

    # Gate-column permutation: PyTorch (i, f, g, o) -> (i, f, o, g) so the three
    # sigmoid gates are contiguous in lanes.
    perm = jnp.concatenate([jnp.arange(0, 2 * H),
                            jnp.arange(3 * H, 4 * H),
                            jnp.arange(2 * H, 3 * H)])

    flat_inputs = [x2d]
    for layer, (w_ih, w_hh, b) in enumerate(layer_params):
        w_ih_t = jnp.transpose(w_ih)[:, perm]                  # (D_l, 4H)
        w_hh_t = jnp.transpose(w_hh)[:, perm]                  # (H, 4H)
        b_p = b[:, perm]                                       # (1, 4H) f32
        if layer == 0 and w_ih_t.shape[0] != D0p:
            w_ih_t = jnp.pad(w_ih_t, ((0, D0p - w_ih_t.shape[0]), (0, 0)))
        flat_inputs += [w_ih_t.astype(jnp.bfloat16),
                        w_hh_t.astype(jnp.bfloat16),
                        b_p.astype(jnp.float32)]
    flat_inputs += [gamma.astype(jnp.float32), beta.astype(jnp.float32)]

    kernel = _make_lstm3_kernel(num_layers, Bp, T, H)

    out2d = pl.pallas_call(
        kernel,
        out_shape=jax.ShapeDtypeStruct((Bp, T * H), jnp.float32),   # lane-dense
        in_specs=[pl.BlockSpec(memory_space=pltpu.MemorySpace.VMEM)
                  for _ in flat_inputs],
        out_specs=pl.BlockSpec(memory_space=pltpu.MemorySpace.VMEM),
    )(*flat_inputs)

    # (Bp, T*H) -> (Bp, T, H): lanes are already in batch-first (t, h) order.
    return out2d.reshape(Bp, T, H)[:B]


def lstm3_reference(x, layer_params, gamma, beta):
    """Pure-JAX f32 reference (mirrors torch nn.LSTM + nn.LayerNorm)."""
    B, T, _ = x.shape
    H = layer_params[0][1].shape[1]
    inp = x.astype(jnp.float32)
    for (w_ih, w_hh, b) in layer_params:
        h0 = jnp.zeros((B, H), jnp.float32)
        c0 = jnp.zeros((B, H), jnp.float32)

        def step(carry, xt):
            h, c = carry
            gates = xt @ w_ih.T + h @ w_hh.T + b
            i_g = jax.nn.sigmoid(gates[:, :H])
            f_g = jax.nn.sigmoid(gates[:, H:2 * H])
            g_g = jnp.tanh(gates[:, 2 * H:3 * H])
            o_g = jax.nn.sigmoid(gates[:, 3 * H:])
            c = f_g * c + i_g * g_g
            h = o_g * jnp.tanh(c)
            return (h, c), h

        _, hs = jax.lax.scan(step, (h0, c0), jnp.swapaxes(inp, 0, 1))
        inp = jnp.swapaxes(hs, 0, 1)

    mean = jnp.mean(inp, axis=-1, keepdims=True)
    var = jnp.mean((inp - mean) ** 2, axis=-1, keepdims=True)
    return (inp - mean) / jnp.sqrt(var + 1e-5) * gamma + beta


def init_params(key, input_dim, num_layers, mode):
    """Deterministic parameter init matching the module's shapes.

    PyTorch default: U(-1/sqrt(H), 1/sqrt(H)) for all LSTM weights/biases;
    LayerNorm gamma=1, beta=0.
    """
    mode_m1 = mode - 1
    in_size = input_dim + mode_m1
    H = input_dim + 2 * mode_m1
    k = 1.0 / jnp.sqrt(jnp.float32(H))

    layer_params = []
    for layer in range(num_layers):
        d_l = in_size if layer == 0 else H
        key, k1, k2, k3, k4 = jax.random.split(key, 5)
        w_ih = jax.random.uniform(k1, (4 * H, d_l), jnp.float32, -k, k)
        w_hh = jax.random.uniform(k2, (4 * H, H), jnp.float32, -k, k)
        b_ih = jax.random.uniform(k3, (4 * H,), jnp.float32, -k, k)
        b_hh = jax.random.uniform(k4, (4 * H,), jnp.float32, -k, k)
        b = (b_ih + b_hh).reshape(1, 4 * H)
        layer_params.append((w_ih, w_hh, b))

    gamma = jnp.ones((1, H), jnp.float32)
    beta = jnp.zeros((1, H), jnp.float32)
    return layer_params, gamma, beta, in_size, H, key


if __name__ == "__main__":
    # Module config: LSTM3(input_dim=28, num_layers=2, mode=3)
    #   -> input_size = 28 + 2 = 30, hidden_size = 28 + 4 = 32
    input_dim, num_layers, mode = 28, 2, 3
    B, T = 2, 8

    key = jax.random.PRNGKey(0)
    layer_params, gamma, beta, in_size, H, key = init_params(
        key, input_dim, num_layers, mode)

    key, kx = jax.random.split(key)
    x = jax.random.normal(kx, (B, T, in_size), jnp.float32)

    out = lstm3_forward(x, layer_params, gamma, beta)
    out = jax.block_until_ready(out)

    ref = lstm3_reference(x, layer_params, gamma, beta)
    assert out.shape == (B, T, H), out.shape
    assert jnp.all(jnp.isfinite(out))
    err = float(jnp.max(jnp.abs(out - ref)))
    # Tolerance covers bf16 MXU-operand rounding accumulated over
    # num_layers * T recurrent matmuls and amplified by LayerNorm;
    # accumulation and all elementwise math remain f32.
    assert err < 2e-2, err

    print("KERNEL_OK")
</pallas_src>

<mosaic_0001>
module attributes {stable_mosaic.version = 11 : i64} {
  func.func @kernel(%arg0: memref<64x32xbf16, #tpu.memory_space<vmem>>, %arg1: memref<32x128xbf16, #tpu.memory_space<vmem>>, %arg2: memref<32x128xbf16, #tpu.memory_space<vmem>>, %arg3: memref<1x128xf32, #tpu.memory_space<vmem>>, %arg4: memref<32x128xbf16, #tpu.memory_space<vmem>>, %arg5: memref<32x128xbf16, #tpu.memory_space<vmem>>, %arg6: memref<1x128xf32, #tpu.memory_space<vmem>>, %arg7: memref<1x32xf32, #tpu.memory_space<vmem>>, %arg8: memref<1x32xf32, #tpu.memory_space<vmem>>, %arg9: memref<8x256xf32, #tpu.memory_space<vmem>>) attributes {dimension_semantics = [], scalar_prefetch = 0 : i64, scratch_operands = 0 : i64, tpu.core_type = #tpu.core_type<tc>} {
    %c0 = arith.constant 0 : index
    %c0_0 = arith.constant 0 : index
    %0 = vector.load %arg2[%c0, %c0_0] : memref<32x128xbf16, #tpu.memory_space<vmem>>, vector<32x128xbf16>
    %c0_1 = arith.constant 0 : index
    %c0_2 = arith.constant 0 : index
    %1 = vector.load %arg3[%c0_1, %c0_2] : memref<1x128xf32, #tpu.memory_space<vmem>>, vector<1x128xf32>
    %c0_3 = arith.constant 0 : index
    %c0_4 = arith.constant 0 : index
    %2 = vector.load %arg0[%c0_3, %c0_4] : memref<64x32xbf16, #tpu.memory_space<vmem>>, vector<64x32xbf16>
    %c0_5 = arith.constant 0 : index
    %c0_6 = arith.constant 0 : index
    %3 = vector.load %arg1[%c0_5, %c0_6] : memref<32x128xbf16, #tpu.memory_space<vmem>>, vector<32x128xbf16>
    %cst = arith.constant dense<0.000000e+00> : vector<64x128xf32>
    %4 = tpu.matmul %2, %3, %cst {dimension_numbers = #tpu.dot_dimension_numbers<[1], [0], [0], [1], [0, 0, 1, 1], [], []>} : vector<64x32xbf16>, vector<32x128xbf16>, vector<64x128xf32> -> vector<64x128xf32>
    %5 = vector.broadcast %1 : vector<1x128xf32> to vector<64x128xf32>
    %6 = arith.addf %4, %5 : vector<64x128xf32>
    %cst_7 = arith.constant 0.000000e+00 : f32
    %7 = vector.broadcast %cst_7 : f32 to vector<8x32xf32>
    %cst_8 = arith.constant 0.000000e+00 : f32
    %8 = vector.broadcast %cst_8 : f32 to vector<8x32xf32>
    %9 = vector.extract_strided_slice %6 {offsets = [0, 0], sizes = [8, 128], strides = [1, 1]} : vector<64x128xf32> to vector<8x128xf32>
    %10 = arith.truncf %7 : vector<8x32xf32> to vector<8x32xbf16>
    %cst_9 = arith.constant dense<0.000000e+00> : vector<8x128xf32>
    %11 = tpu.matmul %10, %0, %cst_9 {dimension_numbers = #tpu.dot_dimension_numbers<[1], [0], [0], [1], [0, 0, 1, 1], [], []>} : vector<8x32xbf16>, vector<32x128xbf16>, vector<8x128xf32> -> vector<8x128xf32>
    %12 = arith.addf %9, %11 : vector<8x128xf32>
    %13 = vector.extract_strided_slice %12 {offsets = [0, 0], sizes = [8, 96], strides = [1, 1]} : vector<8x128xf32> to vector<8x96xf32>
    %14 = arith.negf %13 : vector<8x96xf32>
    %15 = math.exp %14 : vector<8x96xf32>
    %cst_10 = arith.constant 1.000000e+00 : f32
    %16 = vector.broadcast %cst_10 : f32 to vector<8x96xf32>
    %17 = arith.addf %16, %15 : vector<8x96xf32>
    %18 = arith.divf %16, %17 : vector<8x96xf32>
    %19 = vector.extract_strided_slice %18 {offsets = [0, 0], sizes = [8, 32], strides = [1, 1]} : vector<8x96xf32> to vector<8x32xf32>
    %20 = vector.extract_strided_slice %18 {offsets = [0, 32], sizes = [8, 32], strides = [1, 1]} : vector<8x96xf32> to vector<8x32xf32>
    %21 = vector.extract_strided_slice %18 {offsets = [0, 64], sizes = [8, 32], strides = [1, 1]} : vector<8x96xf32> to vector<8x32xf32>
    %22 = vector.extract_strided_slice %12 {offsets = [0, 96], sizes = [8, 32], strides = [1, 1]} : vector<8x128xf32> to vector<8x32xf32>
    %23 = math.tanh %22 : vector<8x32xf32>
    %24 = arith.mulf %20, %8 : vector<8x32xf32>
    %25 = arith.mulf %19, %23 : vector<8x32xf32>
    %26 = arith.addf %24, %25 : vector<8x32xf32>
    %27 = math.tanh %26 : vector<8x32xf32>
    %28 = arith.mulf %21, %27 : vector<8x32xf32>
    %29 = vector.extract_strided_slice %6 {offsets = [8, 0], sizes = [8, 128], strides = [1, 1]} : vector<64x128xf32> to vector<8x128xf32>
    %30 = arith.truncf %28 : vector<8x32xf32> to vector<8x32xbf16>
    %cst_11 = arith.constant dense<0.000000e+00> : vector<8x128xf32>
    %31 = tpu.matmul %30, %0, %cst_11 {dimension_numbers = #tpu.dot_dimension_numbers<[1], [0], [0], [1], [0, 0, 1, 1], [], []>} : vector<8x32xbf16>, vector<32x128xbf16>, vector<8x128xf32> -> vector<8x128xf32>
    %32 = arith.addf %29, %31 : vector<8x128xf32>
    %33 = vector.extract_strided_slice %32 {offsets = [0, 0], sizes = [8, 96], strides = [1, 1]} : vector<8x128xf32> to vector<8x96xf32>
    %34 = arith.negf %33 : vector<8x96xf32>
    %35 = math.exp %34 : vector<8x96xf32>
    %cst_12 = arith.constant 1.000000e+00 : f32
    %36 = vector.broadcast %cst_12 : f32 to vector<8x96xf32>
    %37 = arith.addf %36, %35 : vector<8x96xf32>
    %38 = arith.divf %36, %37 : vector<8x96xf32>
    %39 = vector.extract_strided_slice %38 {offsets = [0, 0], sizes = [8, 32], strides = [1, 1]} : vector<8x96xf32> to vector<8x32xf32>
    %40 = vector.extract_strided_slice %38 {offsets = [0, 32], sizes = [8, 32], strides = [1, 1]} : vector<8x96xf32> to vector<8x32xf32>
    %41 = vector.extract_strided_slice %38 {offsets = [0, 64], sizes = [8, 32], strides = [1, 1]} : vector<8x96xf32> to vector<8x32xf32>
    %42 = vector.extract_strided_slice %32 {offsets = [0, 96], sizes = [8, 32], strides = [1, 1]} : vector<8x128xf32> to vector<8x32xf32>
    %43 = math.tanh %42 : vector<8x32xf32>
    %44 = arith.mulf %40, %26 : vector<8x32xf32>
    %45 = arith.mulf %39, %43 : vector<8x32xf32>
    %46 = arith.addf %44, %45 : vector<8x32xf32>
    %47 = math.tanh %46 : vector<8x32xf32>
    %48 = arith.mulf %41, %47 : vector<8x32xf32>
    %49 = vector.extract_strided_slice %6 {offsets = [16, 0], sizes = [8, 128], strides = [1, 1]} : vector<64x128xf32> to vector<8x128xf32>
    %50 = arith.truncf %48 : vector<8x32xf32> to vector<8x32xbf16>
    %cst_13 = arith.constant dense<0.000000e+00> : vector<8x128xf32>
    %51 = tpu.matmul %50, %0, %cst_13 {dimension_numbers = #tpu.dot_dimension_numbers<[1], [0], [0], [1], [0, 0, 1, 1], [], []>} : vector<8x32xbf16>, vector<32x128xbf16>, vector<8x128xf32> -> vector<8x128xf32>
    %52 = arith.addf %49, %51 : vector<8x128xf32>
    %53 = vector.extract_strided_slice %52 {offsets = [0, 0], sizes = [8, 96], strides = [1, 1]} : vector<8x128xf32> to vector<8x96xf32>
    %54 = arith.negf %53 : vector<8x96xf32>
    %55 = math.exp %54 : vector<8x96xf32>
    %cst_14 = arith.constant 1.000000e+00 : f32
    %56 = vector.broadcast %cst_14 : f32 to vector<8x96xf32>
    %57 = arith.addf %56, %55 : vector<8x96xf32>
    %58 = arith.divf %56, %57 : vector<8x96xf32>
    %59 = vector.extract_strided_slice %58 {offsets = [0, 0], sizes = [8, 32], strides = [1, 1]} : vector<8x96xf32> to vector<8x32xf32>
    %60 = vector.extract_strided_slice %58 {offsets = [0, 32], sizes = [8, 32], strides = [1, 1]} : vector<8x96xf32> to vector<8x32xf32>
    %61 = vector.extract_strided_slice %58 {offsets = [0, 64], sizes = [8, 32], strides = [1, 1]} : vector<8x96xf32> to vector<8x32xf32>
    %62 = vector.extract_strided_slice %52 {offsets = [0, 96], sizes = [8, 32], strides = [1, 1]} : vector<8x128xf32> to vector<8x32xf32>
    %63 = math.tanh %62 : vector<8x32xf32>
    %64 = arith.mulf %60, %46 : vector<8x32xf32>
    %65 = arith.mulf %59, %63 : vector<8x32xf32>
    %66 = arith.addf %64, %65 : vector<8x32xf32>
    %67 = math.tanh %66 : vector<8x32xf32>
    %68 = arith.mulf %61, %67 : vector<8x32xf32>
    %69 = vector.extract_strided_slice %6 {offsets = [24, 0], sizes = [8, 128], strides = [1, 1]} : vector<64x128xf32> to vector<8x128xf32>
    %70 = arith.truncf %68 : vector<8x32xf32> to vector<8x32xbf16>
    %cst_15 = arith.constant dense<0.000000e+00> : vector<8x128xf32>
    %71 = tpu.matmul %70, %0, %cst_15 {dimension_numbers = #tpu.dot_dimension_numbers<[1], [0], [0], [1], [0, 0, 1, 1], [], []>} : vector<8x32xbf16>, vector<32x128xbf16>, vector<8x128xf32> -> vector<8x128xf32>
    %72 = arith.addf %69, %71 : vector<8x128xf32>
    %73 = vector.extract_strided_slice %72 {offsets = [0, 0], sizes = [8, 96], strides = [1, 1]} : vector<8x128xf32> to vector<8x96xf32>
    %74 = arith.negf %73 : vector<8x96xf32>
    %75 = math.exp %74 : vector<8x96xf32>
    %cst_16 = arith.constant 1.000000e+00 : f32
    %76 = vector.broadcast %cst_16 : f32 to vector<8x96xf32>
    %77 = arith.addf %76, %75 : vector<8x96xf32>
    %78 = arith.divf %76, %77 : vector<8x96xf32>
    %79 = vector.extract_strided_slice %78 {offsets = [0, 0], sizes = [8, 32], strides = [1, 1]} : vector<8x96xf32> to vector<8x32xf32>
    %80 = vector.extract_strided_slice %78 {offsets = [0, 32], sizes = [8, 32], strides = [1, 1]} : vector<8x96xf32> to vector<8x32xf32>
    %81 = vector.extract_strided_slice %78 {offsets = [0, 64], sizes = [8, 32], strides = [1, 1]} : vector<8x96xf32> to vector<8x32xf32>
    %82 = vector.extract_strided_slice %72 {offsets = [0, 96], sizes = [8, 32], strides = [1, 1]} : vector<8x128xf32> to vector<8x32xf32>
    %83 = math.tanh %82 : vector<8x32xf32>
    %84 = arith.mulf %80, %66 : vector<8x32xf32>
    %85 = arith.mulf %79, %83 : vector<8x32xf32>
    %86 = arith.addf %84, %85 : vector<8x32xf32>
    %87 = math.tanh %86 : vector<8x32xf32>
    %88 = arith.mulf %81, %87 : vector<8x32xf32>
    %89 = vector.extract_strided_slice %6 {offsets = [32, 0], sizes = [8, 128], strides = [1, 1]} : vector<64x128xf32> to vector<8x128xf32>
    %90 = arith.truncf %88 : vector<8x32xf32> to vector<8x32xbf16>
    %cst_17 = arith.constant dense<0.000000e+00> : vector<8x128xf32>
    %91 = tpu.matmul %90, %0, %cst_17 {dimension_numbers = #tpu.dot_dimension_numbers<[1], [0], [0], [1], [0, 0, 1, 1], [], []>} : vector<8x32xbf16>, vector<32x128xbf16>, vector<8x128xf32> -> vector<8x128xf32>
    %92 = arith.addf %89, %91 : vector<8x128xf32>
    %93 = vector.extract_strided_slice %92 {offsets = [0, 0], sizes = [8, 96], strides = [1, 1]} : vector<8x128xf32> to vector<8x96xf32>
    %94 = arith.negf %93 : vector<8x96xf32>
    %95 = math.exp %94 : vector<8x96xf32>
    %cst_18 = arith.constant 1.000000e+00 : f32
    %96 = vector.broadcast %cst_18 : f32 to vector<8x96xf32>
    %97 = arith.addf %96, %95 : vector<8x96xf32>
    %98 = arith.divf %96, %97 : vector<8x96xf32>
    %99 = vector.extract_strided_slice %98 {offsets = [0, 0], sizes = [8, 32], strides = [1, 1]} : vector<8x96xf32> to vector<8x32xf32>
    %100 = vector.extract_strided_slice %98 {offsets = [0, 32], sizes = [8, 32], strides = [1, 1]} : vector<8x96xf32> to vector<8x32xf32>
    %101 = vector.extract_strided_slice %98 {offsets = [0, 64], sizes = [8, 32], strides = [1, 1]} : vector<8x96xf32> to vector<8x32xf32>
    %102 = vector.extract_strided_slice %92 {offsets = [0, 96], sizes = [8, 32], strides = [1, 1]} : vector<8x128xf32> to vector<8x32xf32>
    %103 = math.tanh %102 : vector<8x32xf32>
    %104 = arith.mulf %100, %86 : vector<8x32xf32>
    %105 = arith.mulf %99, %103 : vector<8x32xf32>
    %106 = arith.addf %104, %105 : vector<8x32xf32>
    %107 = math.tanh %106 : vector<8x32xf32>
    %108 = arith.mulf %101, %107 : vector<8x32xf32>
    %109 = vector.extract_strided_slice %6 {offsets = [40, 0], sizes = [8, 128], strides = [1, 1]} : vector<64x128xf32> to vector<8x128xf32>
    %110 = arith.truncf %108 : vector<8x32xf32> to vector<8x32xbf16>
    %cst_19 = arith.constant dense<0.000000e+00> : vector<8x128xf32>
    %111 = tpu.matmul %110, %0, %cst_19 {dimension_numbers = #tpu.dot_dimension_numbers<[1], [0], [0], [1], [0, 0, 1, 1], [], []>} : vector<8x32xbf16>, vector<32x128xbf16>, vector<8x128xf32> -> vector<8x128xf32>
    %112 = arith.addf %109, %111 : vector<8x128xf32>
    %113 = vector.extract_strided_slice %112 {offsets = [0, 0], sizes = [8, 96], strides = [1, 1]} : vector<8x128xf32> to vector<8x96xf32>
    %114 = arith.negf %113 : vector<8x96xf32>
    %115 = math.exp %114 : vector<8x96xf32>
    %cst_20 = arith.constant 1.000000e+00 : f32
    %116 = vector.broadcast %cst_20 : f32 to vector<8x96xf32>
    %117 = arith.addf %116, %115 : vector<8x96xf32>
    %118 = arith.divf %116, %117 : vector<8x96xf32>
    %119 = vector.extract_strided_slice %118 {offsets = [0, 0], sizes = [8, 32], strides = [1, 1]} : vector<8x96xf32> to vector<8x32xf32>
    %120 = vector.extract_strided_slice %118 {offsets = [0, 32], sizes = [8, 32], strides = [1, 1]} : vector<8x96xf32> to vector<8x32xf32>
    %121 = vector.extract_strided_slice %118 {offsets = [0, 64], sizes = [8, 32], strides = [1, 1]} : vector<8x96xf32> to vector<8x32xf32>
    %122 = vector.extract_strided_slice %112 {offsets = [0, 96], sizes = [8, 32], strides = [1, 1]} : vector<8x128xf32> to vector<8x32xf32>
    %123 = math.tanh %122 : vector<8x32xf32>
    %124 = arith.mulf %120, %106 : vector<8x32xf32>
    %125 = arith.mulf %119, %123 : vector<8x32xf32>
    %126 = arith.addf %124, %125 : vector<8x32xf32>
    %127 = math.tanh %126 : vector<8x32xf32>
    %128 = arith.mulf %121, %127 : vector<8x32xf32>
    %129 = vector.extract_strided_slice %6 {offsets = [48, 0], sizes = [8, 128], strides = [1, 1]} : vector<64x128xf32> to vector<8x128xf32>
    %130 = arith.truncf %128 : vector<8x32xf32> to vector<8x32xbf16>
    %cst_21 = arith.constant dense<0.000000e+00> : vector<8x128xf32>
    %131 = tpu.matmul %130, %0, %cst_21 {dimension_numbers = #tpu.dot_dimension_numbers<[1], [0], [0], [1], [0, 0, 1, 1], [], []>} : vector<8x32xbf16>, vector<32x128xbf16>, vector<8x128xf32> -> vector<8x128xf32>
    %132 = arith.addf %129, %131 : vector<8x128xf32>
    %133 = vector.extract_strided_slice %132 {offsets = [0, 0], sizes = [8, 96], strides = [1, 1]} : vector<8x128xf32> to vector<8x96xf32>
    %134 = arith.negf %133 : vector<8x96xf32>
    %135 = math.exp %134 : vector<8x96xf32>
    %cst_22 = arith.constant 1.000000e+00 : f32
    %136 = vector.broadcast %cst_22 : f32 to vector<8x96xf32>
    %137 = arith.addf %136, %135 : vector<8x96xf32>
    %138 = arith.divf %136, %137 : vector<8x96xf32>
    %139 = vector.extract_strided_slice %138 {offsets = [0, 0], sizes = [8, 32], strides = [1, 1]} : vector<8x96xf32> to vector<8x32xf32>
    %140 = vector.extract_strided_slice %138 {offsets = [0, 32], sizes = [8, 32], strides = [1, 1]} : vector<8x96xf32> to vector<8x32xf32>
    %141 = vector.extract_strided_slice %138 {offsets = [0, 64], sizes = [8, 32], strides = [1, 1]} : vector<8x96xf32> to vector<8x32xf32>
    %142 = vector.extract_strided_slice %132 {offsets = [0, 96], sizes = [8, 32], strides = [1, 1]} : vector<8x128xf32> to vector<8x32xf32>
    %143 = math.tanh %142 : vector<8x32xf32>
    %144 = arith.mulf %140, %126 : vector<8x32xf32>
    %145 = arith.mulf %139, %143 : vector<8x32xf32>
    %146 = arith.addf %144, %145 : vector<8x32xf32>
    %147 = math.tanh %146 : vector<8x32xf32>
    %148 = arith.mulf %141, %147 : vector<8x32xf32>
    %149 = vector.extract_strided_slice %6 {offsets = [56, 0], sizes = [8, 128], strides = [1, 1]} : vector<64x128xf32> to vector<8x128xf32>
    %150 = arith.truncf %148 : vector<8x32xf32> to vector<8x32xbf16>
    %cst_23 = arith.constant dense<0.000000e+00> : vector<8x128xf32>
    %151 = tpu.matmul %150, %0, %cst_23 {dimension_numbers = #tpu.dot_dimension_numbers<[1], [0], [0], [1], [0, 0, 1, 1], [], []>} : vector<8x32xbf16>, vector<32x128xbf16>, vector<8x128xf32> -> vector<8x128xf32>
    %152 = arith.addf %149, %151 : vector<8x128xf32>
    %153 = vector.extract_strided_slice %152 {offsets = [0, 0], sizes = [8, 96], strides = [1, 1]} : vector<8x128xf32> to vector<8x96xf32>
    %154 = arith.negf %153 : vector<8x96xf32>
    %155 = math.exp %154 : vector<8x96xf32>
    %cst_24 = arith.constant 1.000000e+00 : f32
    %156 = vector.broadcast %cst_24 : f32 to vector<8x96xf32>
    %157 = arith.addf %156, %155 : vector<8x96xf32>
    %158 = arith.divf %156, %157 : vector<8x96xf32>
    %159 = vector.extract_strided_slice %158 {offsets = [0, 0], sizes = [8, 32], strides = [1, 1]} : vector<8x96xf32> to vector<8x32xf32>
    %160 = vector.extract_strided_slice %158 {offsets = [0, 32], sizes = [8, 32], strides = [1, 1]} : vector<8x96xf32> to vector<8x32xf32>
    %161 = vector.extract_strided_slice %158 {offsets = [0, 64], sizes = [8, 32], strides = [1, 1]} : vector<8x96xf32> to vector<8x32xf32>
    %162 = vector.extract_strided_slice %152 {offsets = [0, 96], sizes = [8, 32], strides = [1, 1]} : vector<8x128xf32> to vector<8x32xf32>
    %163 = math.tanh %162 : vector<8x32xf32>
    %164 = arith.mulf %160, %146 : vector<8x32xf32>
    %165 = arith.mulf %159, %163 : vector<8x32xf32>
    %166 = arith.addf %164, %165 : vector<8x32xf32>
    %167 = math.tanh %166 : vector<8x32xf32>
    %168 = arith.mulf %161, %167 : vector<8x32xf32>
    %c0_25 = arith.constant 0 : index
    %c0_26 = arith.constant 0 : index
    %169 = vector.load %arg5[%c0_25, %c0_26] : memref<32x128xbf16, #tpu.memory_space<vmem>>, vector<32x128xbf16>
    %c0_27 = arith.constant 0 : index
    %c0_28 = arith.constant 0 : index
    %170 = vector.load %arg6[%c0_27, %c0_28] : memref<1x128xf32, #tpu.memory_space<vmem>>, vector<1x128xf32>
    %171 = tpu.concatenate %28, %48, %68, %88, %108, %128, %148, %168 in 0 : vector<8x32xf32>, vector<8x32xf32>, vector<8x32xf32>, vector<8x32xf32>, vector<8x32xf32>, vector<8x32xf32>, vector<8x32xf32>, vector<8x32xf32> -> vector<64x32xf32>
    %172 = arith.truncf %171 : vector<64x32xf32> to vector<64x32xbf16>
    %c0_29 = arith.constant 0 : index
    %c0_30 = arith.constant 0 : index
    %173 = vector.load %arg4[%c0_29, %c0_30] : memref<32x128xbf16, #tpu.memory_space<vmem>>, vector<32x128xbf16>
    %cst_31 = arith.constant dense<0.000000e+00> : vector<64x128xf32>
    %174 = tpu.matmul %172, %173, %cst_31 {dimension_numbers = #tpu.dot_dimension_numbers<[1], [0], [0], [1], [0, 0, 1, 1], [], []>} : vector<64x32xbf16>, vector<32x128xbf16>, vector<64x128xf32> -> vector<64x128xf32>
    %175 = vector.broadcast %170 : vector<1x128xf32> to vector<64x128xf32>
    %176 = arith.addf %174, %175 : vector<64x128xf32>
    %cst_32 = arith.constant 0.000000e+00 : f32
    %177 = vector.broadcast %cst_32 : f32 to vector<8x32xf32>
    %cst_33 = arith.constant 0.000000e+00 : f32
    %178 = vector.broadcast %cst_33 : f32 to vector<8x32xf32>
    %179 = vector.extract_strided_slice %176 {offsets = [0, 0], sizes = [8, 128], strides = [1, 1]} : vector<64x128xf32> to vector<8x128xf32>
    %180 = arith.truncf %177 : vector<8x32xf32> to vector<8x32xbf16>
    %cst_34 = arith.constant dense<0.000000e+00> : vector<8x128xf32>
    %181 = tpu.matmul %180, %169, %cst_34 {dimension_numbers = #tpu.dot_dimension_numbers<[1], [0], [0], [1], [0, 0, 1, 1], [], []>} : vector<8x32xbf16>, vector<32x128xbf16>, vector<8x128xf32> -> vector<8x128xf32>
    %182 = arith.addf %179, %181 : vector<8x128xf32>
    %183 = vector.extract_strided_slice %182 {offsets = [0, 0], sizes = [8, 96], strides = [1, 1]} : vector<8x128xf32> to vector<8x96xf32>
    %184 = arith.negf %183 : vector<8x96xf32>
    %185 = math.exp %184 : vector<8x96xf32>
    %cst_35 = arith.constant 1.000000e+00 : f32
    %186 = vector.broadcast %cst_35 : f32 to vector<8x96xf32>
    %187 = arith.addf %186, %185 : vector<8x96xf32>
    %188 = arith.divf %186, %187 : vector<8x96xf32>
    %189 = vector.extract_strided_slice %188 {offsets = [0, 0], sizes = [8, 32], strides = [1, 1]} : vector<8x96xf32> to vector<8x32xf32>
    %190 = vector.extract_strided_slice %188 {offsets = [0, 32], sizes = [8, 32], strides = [1, 1]} : vector<8x96xf32> to vector<8x32xf32>
    %191 = vector.extract_strided_slice %188 {offsets = [0, 64], sizes = [8, 32], strides = [1, 1]} : vector<8x96xf32> to vector<8x32xf32>
    %192 = vector.extract_strided_slice %182 {offsets = [0, 96], sizes = [8, 32], strides = [1, 1]} : vector<8x128xf32> to vector<8x32xf32>
    %193 = math.tanh %192 : vector<8x32xf32>
    %194 = arith.mulf %190, %178 : vector<8x32xf32>
    %195 = arith.mulf %189, %193 : vector<8x32xf32>
    %196 = arith.addf %194, %195 : vector<8x32xf32>
    %197 = math.tanh %196 : vector<8x32xf32>
    %198 = arith.mulf %191, %197 : vector<8x32xf32>
    %199 = vector.extract_strided_slice %176 {offsets = [8, 0], sizes = [8, 128], strides = [1, 1]} : vector<64x128xf32> to vector<8x128xf32>
    %200 = arith.truncf %198 : vector<8x32xf32> to vector<8x32xbf16>
    %cst_36 = arith.constant dense<0.000000e+00> : vector<8x128xf32>
    %201 = tpu.matmul %200, %169, %cst_36 {dimension_numbers = #tpu.dot_dimension_numbers<[1], [0], [0], [1], [0, 0, 1, 1], [], []>} : vector<8x32xbf16>, vector<32x128xbf16>, vector<8x128xf32> -> vector<8x128xf32>
    %202 = arith.addf %199, %201 : vector<8x128xf32>
    %203 = vector.extract_strided_slice %202 {offsets = [0, 0], sizes = [8, 96], strides = [1, 1]} : vector<8x128xf32> to vector<8x96xf32>
    %204 = arith.negf %203 : vector<8x96xf32>
    %205 = math.exp %204 : vector<8x96xf32>
    %cst_37 = arith.constant 1.000000e+00 : f32
    %206 = vector.broadcast %cst_37 : f32 to vector<8x96xf32>
    %207 = arith.addf %206, %205 : vector<8x96xf32>
    %208 = arith.divf %206, %207 : vector<8x96xf32>
    %209 = vector.extract_strided_slice %208 {offsets = [0, 0], sizes = [8, 32], strides = [1, 1]} : vector<8x96xf32> to vector<8x32xf32>
    %210 = vector.extract_strided_slice %208 {offsets = [0, 32], sizes = [8, 32], strides = [1, 1]} : vector<8x96xf32> to vector<8x32xf32>
    %211 = vector.extract_strided_slice %208 {offsets = [0, 64], sizes = [8, 32], strides = [1, 1]} : vector<8x96xf32> to vector<8x32xf32>
    %212 = vector.extract_strided_slice %202 {offsets = [0, 96], sizes = [8, 32], strides = [1, 1]} : vector<8x128xf32> to vector<8x32xf32>
    %213 = math.tanh %212 : vector<8x32xf32>
    %214 = arith.mulf %210, %196 : vector<8x32xf32>
    %215 = arith.mulf %209, %213 : vector<8x32xf32>
    %216 = arith.addf %214, %215 : vector<8x32xf32>
    %217 = math.tanh %216 : vector<8x32xf32>
    %218 = arith.mulf %211, %217 : vector<8x32xf32>
    %219 = vector.extract_strided_slice %176 {offsets = [16, 0], sizes = [8, 128], strides = [1, 1]} : vector<64x128xf32> to vector<8x128xf32>
    %220 = arith.truncf %218 : vector<8x32xf32> to vector<8x32xbf16>
    %cst_38 = arith.constant dense<0.000000e+00> : vector<8x128xf32>
    %221 = tpu.matmul %220, %169, %cst_38 {dimension_numbers = #tpu.dot_dimension_numbers<[1], [0], [0], [1], [0, 0, 1, 1], [], []>} : vector<8x32xbf16>, vector<32x128xbf16>, vector<8x128xf32> -> vector<8x128xf32>
    %222 = arith.addf %219, %221 : vector<8x128xf32>
    %223 = vector.extract_strided_slice %222 {offsets = [0, 0], sizes = [8, 96], strides = [1, 1]} : vector<8x128xf32> to vector<8x96xf32>
    %224 = arith.negf %223 : vector<8x96xf32>
    %225 = math.exp %224 : vector<8x96xf32>
    %cst_39 = arith.constant 1.000000e+00 : f32
    %226 = vector.broadcast %cst_39 : f32 to vector<8x96xf32>
    %227 = arith.addf %226, %225 : vector<8x96xf32>
    %228 = arith.divf %226, %227 : vector<8x96xf32>
    %229 = vector.extract_strided_slice %228 {offsets = [0, 0], sizes = [8, 32], strides = [1, 1]} : vector<8x96xf32> to vector<8x32xf32>
    %230 = vector.extract_strided_slice %228 {offsets = [0, 32], sizes = [8, 32], strides = [1, 1]} : vector<8x96xf32> to vector<8x32xf32>
    %231 = vector.extract_strided_slice %228 {offsets = [0, 64], sizes = [8, 32], strides = [1, 1]} : vector<8x96xf32> to vector<8x32xf32>
    %232 = vector.extract_strided_slice %222 {offsets = [0, 96], sizes = [8, 32], strides = [1, 1]} : vector<8x128xf32> to vector<8x32xf32>
    %233 = math.tanh %232 : vector<8x32xf32>
    %234 = arith.mulf %230, %216 : vector<8x32xf32>
    %235 = arith.mulf %229, %233 : vector<8x32xf32>
    %236 = arith.addf %234, %235 : vector<8x32xf32>
    %237 = math.tanh %236 : vector<8x32xf32>
    %238 = arith.mulf %231, %237 : vector<8x32xf32>
    %239 = vector.extract_strided_slice %176 {offsets = [24, 0], sizes = [8, 128], strides = [1, 1]} : vector<64x128xf32> to vector<8x128xf32>
    %240 = arith.truncf %238 : vector<8x32xf32> to vector<8x32xbf16>
    %cst_40 = arith.constant dense<0.000000e+00> : vector<8x128xf32>
    %241 = tpu.matmul %240, %169, %cst_40 {dimension_numbers = #tpu.dot_dimension_numbers<[1], [0], [0], [1], [0, 0, 1, 1], [], []>} : vector<8x32xbf16>, vector<32x128xbf16>, vector<8x128xf32> -> vector<8x128xf32>
    %242 = arith.addf %239, %241 : vector<8x128xf32>
    %243 = vector.extract_strided_slice %242 {offsets = [0, 0], sizes = [8, 96], strides = [1, 1]} : vector<8x128xf32> to vector<8x96xf32>
    %244 = arith.negf %243 : vector<8x96xf32>
    %245 = math.exp %244 : vector<8x96xf32>
    %cst_41 = arith.constant 1.000000e+00 : f32
    %246 = vector.broadcast %cst_41 : f32 to vector<8x96xf32>
    %247 = arith.addf %246, %245 : vector<8x96xf32>
    %248 = arith.divf %246, %247 : vector<8x96xf32>
    %249 = vector.extract_strided_slice %248 {offsets = [0, 0], sizes = [8, 32], strides = [1, 1]} : vector<8x96xf32> to vector<8x32xf32>
    %250 = vector.extract_strided_slice %248 {offsets = [0, 32], sizes = [8, 32], strides = [1, 1]} : vector<8x96xf32> to vector<8x32xf32>
    %251 = vector.extract_strided_slice %248 {offsets = [0, 64], sizes = [8, 32], strides = [1, 1]} : vector<8x96xf32> to vector<8x32xf32>
    %252 = vector.extract_strided_slice %242 {offsets = [0, 96], sizes = [8, 32], strides = [1, 1]} : vector<8x128xf32> to vector<8x32xf32>
    %253 = math.tanh %252 : vector<8x32xf32>
    %254 = arith.mulf %250, %236 : vector<8x32xf32>
    %255 = arith.mulf %249, %253 : vector<8x32xf32>
    %256 = arith.addf %254, %255 : vector<8x32xf32>
    %257 = math.tanh %256 : vector<8x32xf32>
    %258 = arith.mulf %251, %257 : vector<8x32xf32>
    %259 = vector.extract_strided_slice %176 {offsets = [32, 0], sizes = [8, 128], strides = [1, 1]} : vector<64x128xf32> to vector<8x128xf32>
    %260 = arith.truncf %258 : vector<8x32xf32> to vector<8x32xbf16>
    %cst_42 = arith.constant dense<0.000000e+00> : vector<8x128xf32>
    %261 = tpu.matmul %260, %169, %cst_42 {dimension_numbers = #tpu.dot_dimension_numbers<[1], [0], [0], [1], [0, 0, 1, 1], [], []>} : vector<8x32xbf16>, vector<32x128xbf16>, vector<8x128xf32> -> vector<8x128xf32>
    %262 = arith.addf %259, %261 : vector<8x128xf32>
    %263 = vector.extract_strided_slice %262 {offsets = [0, 0], sizes = [8, 96], strides = [1, 1]} : vector<8x128xf32> to vector<8x96xf32>
    %264 = arith.negf %263 : vector<8x96xf32>
    %265 = math.exp %264 : vector<8x96xf32>
    %cst_43 = arith.constant 1.000000e+00 : f32
    %266 = vector.broadcast %cst_43 : f32 to vector<8x96xf32>
    %267 = arith.addf %266, %265 : vector<8x96xf32>
    %268 = arith.divf %266, %267 : vector<8x96xf32>
    %269 = vector.extract_strided_slice %268 {offsets = [0, 0], sizes = [8, 32], strides = [1, 1]} : vector<8x96xf32> to vector<8x32xf32>
    %270 = vector.extract_strided_slice %268 {offsets = [0, 32], sizes = [8, 32], strides = [1, 1]} : vector<8x96xf32> to vector<8x32xf32>
    %271 = vector.extract_strided_slice %268 {offsets = [0, 64], sizes = [8, 32], strides = [1, 1]} : vector<8x96xf32> to vector<8x32xf32>
    %272 = vector.extract_strided_slice %262 {offsets = [0, 96], sizes = [8, 32], strides = [1, 1]} : vector<8x128xf32> to vector<8x32xf32>
    %273 = math.tanh %272 : vector<8x32xf32>
    %274 = arith.mulf %270, %256 : vector<8x32xf32>
    %275 = arith.mulf %269, %273 : vector<8x32xf32>
    %276 = arith.addf %274, %275 : vector<8x32xf32>
    %277 = math.tanh %276 : vector<8x32xf32>
    %278 = arith.mulf %271, %277 : vector<8x32xf32>
    %279 = vector.extract_strided_slice %176 {offsets = [40, 0], sizes = [8, 128], strides = [1, 1]} : vector<64x128xf32> to vector<8x128xf32>
    %280 = arith.truncf %278 : vector<8x32xf32> to vector<8x32xbf16>
    %cst_44 = arith.constant dense<0.000000e+00> : vector<8x128xf32>
    %281 = tpu.matmul %280, %169, %cst_44 {dimension_numbers = #tpu.dot_dimension_numbers<[1], [0], [0], [1], [0, 0, 1, 1], [], []>} : vector<8x32xbf16>, vector<32x128xbf16>, vector<8x128xf32> -> vector<8x128xf32>
    %282 = arith.addf %279, %281 : vector<8x128xf32>
    %283 = vector.extract_strided_slice %282 {offsets = [0, 0], sizes = [8, 96], strides = [1, 1]} : vector<8x128xf32> to vector<8x96xf32>
    %284 = arith.negf %283 : vector<8x96xf32>
    %285 = math.exp %284 : vector<8x96xf32>
    %cst_45 = arith.constant 1.000000e+00 : f32
    %286 = vector.broadcast %cst_45 : f32 to vector<8x96xf32>
    %287 = arith.addf %286, %285 : vector<8x96xf32>
    %288 = arith.divf %286, %287 : vector<8x96xf32>
    %289 = vector.extract_strided_slice %288 {offsets = [0, 0], sizes = [8, 32], strides = [1, 1]} : vector<8x96xf32> to vector<8x32xf32>
    %290 = vector.extract_strided_slice %288 {offsets = [0, 32], sizes = [8, 32], strides = [1, 1]} : vector<8x96xf32> to vector<8x32xf32>
    %291 = vector.extract_strided_slice %288 {offsets = [0, 64], sizes = [8, 32], strides = [1, 1]} : vector<8x96xf32> to vector<8x32xf32>
    %292 = vector.extract_strided_slice %282 {offsets = [0, 96], sizes = [8, 32], strides = [1, 1]} : vector<8x128xf32> to vector<8x32xf32>
    %293 = math.tanh %292 : vector<8x32xf32>
    %294 = arith.mulf %290, %276 : vector<8x32xf32>
    %295 = arith.mulf %289, %293 : vector<8x32xf32>
    %296 = arith.addf %294, %295 : vector<8x32xf32>
    %297 = math.tanh %296 : vector<8x32xf32>
    %298 = arith.mulf %291, %297 : vector<8x32xf32>
    %299 = vector.extract_strided_slice %176 {offsets = [48, 0], sizes = [8, 128], strides = [1, 1]} : vector<64x128xf32> to vector<8x128xf32>
    %300 = arith.truncf %298 : vector<8x32xf32> to vector<8x32xbf16>
    %cst_46 = arith.constant dense<0.000000e+00> : vector<8x128xf32>
    %301 = tpu.matmul %300, %169, %cst_46 {dimension_numbers = #tpu.dot_dimension_numbers<[1], [0], [0], [1], [0, 0, 1, 1], [], []>} : vector<8x32xbf16>, vector<32x128xbf16>, vector<8x128xf32> -> vector<8x128xf32>
    %302 = arith.addf %299, %301 : vector<8x128xf32>
    %303 = vector.extract_strided_slice %302 {offsets = [0, 0], sizes = [8, 96], strides = [1, 1]} : vector<8x128xf32> to vector<8x96xf32>
    %304 = arith.negf %303 : vector<8x96xf32>
    %305 = math.exp %304 : vector<8x96xf32>
    %cst_47 = arith.constant 1.000000e+00 : f32
    %306 = vector.broadcast %cst_47 : f32 to vector<8x96xf32>
    %307 = arith.addf %306, %305 : vector<8x96xf32>
    %308 = arith.divf %306, %307 : vector<8x96xf32>
    %309 = vector.extract_strided_slice %308 {offsets = [0, 0], sizes = [8, 32], strides = [1, 1]} : vector<8x96xf32> to vector<8x32xf32>
    %310 = vector.extract_strided_slice %308 {offsets = [0, 32], sizes = [8, 32], strides = [1, 1]} : vector<8x96xf32> to vector<8x32xf32>
    %311 = vector.extract_strided_slice %308 {offsets = [0, 64], sizes = [8, 32], strides = [1, 1]} : vector<8x96xf32> to vector<8x32xf32>
    %312 = vector.extract_strided_slice %302 {offsets = [0, 96], sizes = [8, 32], strides = [1, 1]} : vector<8x128xf32> to vector<8x32xf32>
    %313 = math.tanh %312 : vector<8x32xf32>
    %314 = arith.mulf %310, %296 : vector<8x32xf32>
    %315 = arith.mulf %309, %313 : vector<8x32xf32>
    %316 = arith.addf %314, %315 : vector<8x32xf32>
    %317 = math.tanh %316 : vector<8x32xf32>
    %318 = arith.mulf %311, %317 : vector<8x32xf32>
    %319 = vector.extract_strided_slice %176 {offsets = [56, 0], sizes = [8, 128], strides = [1, 1]} : vector<64x128xf32> to vector<8x128xf32>
    %320 = arith.truncf %318 : vector<8x32xf32> to vector<8x32xbf16>
    %cst_48 = arith.constant dense<0.000000e+00> : vector<8x128xf32>
    %321 = tpu.matmul %320, %169, %cst_48 {dimension_numbers = #tpu.dot_dimension_numbers<[1], [0], [0], [1], [0, 0, 1, 1], [], []>} : vector<8x32xbf16>, vector<32x128xbf16>, vector<8x128xf32> -> vector<8x128xf32>
    %322 = arith.addf %319, %321 : vector<8x128xf32>
    %323 = vector.extract_strided_slice %322 {offsets = [0, 0], sizes = [8, 96], strides = [1, 1]} : vector<8x128xf32> to vector<8x96xf32>
    %324 = arith.negf %323 : vector<8x96xf32>
    %325 = math.exp %324 : vector<8x96xf32>
    %cst_49 = arith.constant 1.000000e+00 : f32
    %326 = vector.broadcast %cst_49 : f32 to vector<8x96xf32>
    %327 = arith.addf %326, %325 : vector<8x96xf32>
    %328 = arith.divf %326, %327 : vector<8x96xf32>
    %329 = vector.extract_strided_slice %328 {offsets = [0, 0], sizes = [8, 32], strides = [1, 1]} : vector<8x96xf32> to vector<8x32xf32>
    %330 = vector.extract_strided_slice %328 {offsets = [0, 32], sizes = [8, 32], strides = [1, 1]} : vector<8x96xf32> to vector<8x32xf32>
    %331 = vector.extract_strided_slice %328 {offsets = [0, 64], sizes = [8, 32], strides = [1, 1]} : vector<8x96xf32> to vector<8x32xf32>
    %332 = vector.extract_strided_slice %322 {offsets = [0, 96], sizes = [8, 32], strides = [1, 1]} : vector<8x128xf32> to vector<8x32xf32>
    %333 = math.tanh %332 : vector<8x32xf32>
    %334 = arith.mulf %330, %316 : vector<8x32xf32>
    %335 = arith.mulf %329, %333 : vector<8x32xf32>
    %336 = arith.addf %334, %335 : vector<8x32xf32>
    %337 = math.tanh %336 : vector<8x32xf32>
    %338 = arith.mulf %331, %337 : vector<8x32xf32>
    %339 = tpu.concatenate %198, %218, %238, %258, %278, %298, %318, %338 in 0 : vector<8x32xf32>, vector<8x32xf32>, vector<8x32xf32>, vector<8x32xf32>, vector<8x32xf32>, vector<8x32xf32>, vector<8x32xf32>, vector<8x32xf32> -> vector<64x32xf32>
    %cst_50 = arith.constant dense<0.000000e+00> : vector<64xf32>
    %340 = vector.multi_reduction <add>, %339, %cst_50 [1] : vector<64x32xf32> to vector<64xf32>
    %341 = vector.shape_cast %340 : vector<64xf32> to vector<64x1xf32>
    %cst_51 = arith.constant 3.200000e+01 : f32
    %342 = vector.broadcast %cst_51 : f32 to vector<64x1xf32>
    %343 = arith.divf %341, %342 : vector<64x1xf32>
    %344 = vector.broadcast %343 : vector<64x1xf32> to vector<64x32xf32>
    %345 = arith.subf %339, %344 : vector<64x32xf32>
    %346 = arith.mulf %345, %345 : vector<64x32xf32>
    %cst_52 = arith.constant dense<0.000000e+00> : vector<64xf32>
    %347 = vector.multi_reduction <add>, %346, %cst_52 [1] : vector<64x32xf32> to vector<64xf32>
    %348 = vector.shape_cast %347 : vector<64xf32> to vector<64x1xf32>
    %cst_53 = arith.constant 3.200000e+01 : f32
    %349 = vector.broadcast %cst_53 : f32 to vector<64x1xf32>
    %350 = arith.divf %348, %349 : vector<64x1xf32>
    %cst_54 = arith.constant 9.99999974E-6 : f32
    %351 = vector.broadcast %cst_54 : f32 to vector<64x1xf32>
    %352 = arith.addf %350, %351 : vector<64x1xf32>
    %353 = math.rsqrt %352 : vector<64x1xf32>
    %354 = vector.broadcast %353 : vector<64x1xf32> to vector<64x32xf32>
    %355 = arith.mulf %345, %354 : vector<64x32xf32>
    %c0_55 = arith.constant 0 : index
    %c0_56 = arith.constant 0 : index
    %356 = vector.load %arg7[%c0_55, %c0_56] : memref<1x32xf32, #tpu.memory_space<vmem>>, vector<1x32xf32>
    %357 = vector.broadcast %356 : vector<1x32xf32> to vector<64x32xf32>
    %358 = arith.mulf %355, %357 : vector<64x32xf32>
    %c0_57 = arith.constant 0 : index
    %c0_58 = arith.constant 0 : index
    %359 = vector.load %arg8[%c0_57, %c0_58] : memref<1x32xf32, #tpu.memory_space<vmem>>, vector<1x32xf32>
    %360 = vector.broadcast %359 : vector<1x32xf32> to vector<64x32xf32>
    %361 = arith.addf %358, %360 : vector<64x32xf32>
    %362 = vector.extract_strided_slice %361 {offsets = [0, 0], sizes = [8, 32], strides = [1, 1]} : vector<64x32xf32> to vector<8x32xf32>
    %363 = vector.extract_strided_slice %361 {offsets = [8, 0], sizes = [8, 32], strides = [1, 1]} : vector<64x32xf32> to vector<8x32xf32>
    %364 = vector.extract_strided_slice %361 {offsets = [16, 0], sizes = [8, 32], strides = [1, 1]} : vector<64x32xf32> to vector<8x32xf32>
    %365 = vector.extract_strided_slice %361 {offsets = [24, 0], sizes = [8, 32], strides = [1, 1]} : vector<64x32xf32> to vector<8x32xf32>
    %366 = vector.extract_strided_slice %361 {offsets = [32, 0], sizes = [8, 32], strides = [1, 1]} : vector<64x32xf32> to vector<8x32xf32>
    %367 = vector.extract_strided_slice %361 {offsets = [40, 0], sizes = [8, 32], strides = [1, 1]} : vector<64x32xf32> to vector<8x32xf32>
    %368 = vector.extract_strided_slice %361 {offsets = [48, 0], sizes = [8, 32], strides = [1, 1]} : vector<64x32xf32> to vector<8x32xf32>
    %369 = vector.extract_strided_slice %361 {offsets = [56, 0], sizes = [8, 32], strides = [1, 1]} : vector<64x32xf32> to vector<8x32xf32>
    %370 = tpu.concatenate %362, %363, %364, %365, %366, %367, %368, %369 in 1 : vector<8x32xf32>, vector<8x32xf32>, vector<8x32xf32>, vector<8x32xf32>, vector<8x32xf32>, vector<8x32xf32>, vector<8x32xf32>, vector<8x32xf32> -> vector<8x256xf32>
    %c0_59 = arith.constant 0 : index
    %c0_60 = arith.constant 0 : index
    %371 = vector.load %arg9[%c0_59, %c0_60] : memref<8x256xf32, #tpu.memory_space<vmem>>, vector<8x256xf32>
    tpu.vector_store %arg9[%c0_59, %c0_60], %370 {strides = array<i32>} : memref<8x256xf32, #tpu.memory_space<vmem>>, vector<8x256xf32>,
    return
  }
}

</mosaic_0001>

<bundles_post_ra>
// kernel: tpu_custom_call.1
= control target key start
LH: loop header
LB: loop body
LE: loop exit
PB: predicated region body
PF: predicated region fallthrough
CT: control target
= control target key end

     0   :  { %v2156_v1 = vmov 0.0   ;;  %vm89_vm0 = vcmask 261120   ;;  %vm2157_vm1 = vmmov 0   ;;  %v2158_v7 = vmov 0   ;;  %s2688_s0 = inlined_call_operand.vmem [shape: bf16[64,32], index: 0, kind: input, shape index: {}]   ;;  %s2689_s1 = inlined_call_operand.vmem [shape: bf16[32,128], index: 1, kind: input, shape index: {}]   ;;  %s2690_s2 = inlined_call_operand.vmem [shape: bf16[32,128], index: 2, kind: input, shape index: {}]   ;;  %s2691_s3 = inlined_call_operand.vmem [shape: f32[1,128], index: 3, kind: input, shape index: {}]   ;;  %s2692_s4 = inlined_call_operand.vmem [shape: bf16[32,128], index: 4, kind: input, shape index: {}]   ;;  %s2693_s5 = inlined_call_operand.vmem [shape: bf16[32,128], index: 5, kind: input, shape index: {}]   ;;  %s2694_s6 = inlined_call_operand.vmem [shape: f32[1,128], index: 6, kind: input, shape index: {}]   ;;  %s2695_s7 = inlined_call_operand.vmem [shape: f32[1,32], index: 7, kind: input, shape index: {}]   ;;  %s2696_s8 = inlined_call_operand.vmem [shape: f32[1,32], index: 8, kind: input, shape index: {}]   ;;  %s2697_s9 = inlined_call_operand.hbm [shape: f32[8,256], index: 9, kind: output, shape index: {}]  }
   0x1   :  { %v1976_v0 = vld [vmem:[%s2689_s1] sm:$0xff]   ;;  %1829 = vmatprep.subr.bf16.mxu1 %v2156_v1  ;;  %v1978_v3 = vld [vmem:[%s2689_s1 + $0x8] sm:$0xff]   ;;  %1833 = vmatprep.mubr.msk.bf16.mxu1 %vm2157_vm1, %v2156_v1 }
   0x2   :  { %v2220_v2 = vld [vmem:[%s2690_s2] sm:$0xff]   ;;  %1817 = vmatprep.subr.bf16.mxu0 %v1976_v0  ;;  %v2229_v4 = vld [vmem:[%s2690_s2 + $0x8] sm:$0xff]  }
   0x3   :  { %1818 = vmatpush3.bf16.msra.mxu0 %v1976_v0  ;;  %1830 = vmatpush3.bf16.msra.mxu1 %v2220_v2  ;;  %v1980_v5 = vld [vmem:[%s2688_s0] sm:$0xff]   ;;  %v1981_v6 = vld [vmem:[%s2688_s0 + $0x8] sm:$0xff]  }
   0x4   :  { %1819 = vmatprep.subr.bf16.mxu0 %v1978_v3  ;;  %1831 = vmatprep.subr.bf16.mxu1 %v2156_v1 }
   0x5   :  { %1821 = vmatprep.mubr.msk.bf16.mxu0 %vm89_vm0, %v1980_v5 }
   0x7   :  { %1820 = vmatpush3.bf16.msra.mxu0 %v1978_v3  ;;  %1832 = vmatpush3.bf16.msra.mxu1 %v2229_v4 }
   0x8   :  { %1837 = vmatprep.subr.bf16.mxu1 %v2156_v1  ;;  %1845 = vmatprep.subr.bf16.mxu0 %v2156_v1 }
   0xa   :  { %1822 = vmatmul.mubr.msk.bf16.vlgmr.msra.gmra.mrb[0].mxu0 %vm89_vm0, %v1981_v6  ;;  %1834 = vmatmul.mubr.bf16.vlgmr.msra.gmra.mrb[0].mxu1 %v2158_v7 }
   0xb   :  { %14 = vsyncpa [#allocation3], 0  ;;  %1838 = vmatpush3.bf16.msra.mxu1 %v2220_v2  ;;  %1841 = vmatprep.mubr.msk.bf16.mxu1 %vm2157_vm1, %v2156_v1  ;;  %v2259_v8 = vld [vmem:[%s2691_s3] ss:$0 sm:$0xff]  ;;  %s2159_s21 = smov 32   ;;  %s2160_s3 = smov 64  }
   0xc   :  { %1839 = vmatprep.subr.bf16.mxu1 %v2156_v1  ;;  %1846 = vmatpush3.bf16.msra.mxu0 %v2220_v2  ;;  %v1982_v50 = vld [vmem:[%s2688_s0 + $0x10] sm:$0xff]   ;;  %v1983_v51 = vld [vmem:[%s2688_s0 + $0x18] sm:$0xff]   ;;  %vm1680_vm2 = vcmask 523264   ;;  %vm1682_vm3 = vcmask 785408  }
   0xd   :  { %1847 = vmatprep.subr.bf16.mxu0 %v2156_v1  ;;  %1825 = vmatprep.mubr.msk.bf16.mxu0 %vm89_vm0, %v1982_v50 }
   0xf   :  { %1840 = vmatpush3.bf16.msra.mxu1 %v2229_v4 }
  0x10   :  { %1848 = vmatpush3.bf16.msra.mxu0 %v2229_v4  ;;  %1853 = vmatprep.subr.bf16.mxu1 %v2156_v1 }
  0x11   :  { %1861 = vmatprep.subr.bf16.mxu0 %v2156_v1 }
  0x12   :  { %1826 = vmatmul.mubr.msk.bf16.gmra.mrb[4].mxu0 %vm89_vm0, %v1983_v51 }
  0x13   :  { %1849 = vmatprep.mubr.msk.bf16.mxu0 %vm2157_vm1, %v2156_v1 }
  0xdd   :  { %v2261_v9 = vpop.f32.mrb[0].mxu0  ;;  %v216_v10 = vpop.f32.mrb[0].mxu1 }
  0xde   :  { %v136_v11 = vpop.f32.mrb[1].mxu0  ;;  %v1835_v12 = vpop.f32.mrb[1].mxu1  ;;  %v145_v61 = vadd.f32 %v2261_v9, %v2259_v8 }
  0xdf   :  { %v137_v13 = vadd.f32 %v2259_v8, %v136_v11  ;;  %v2264_v14 = vpop.f32.mrb[2].mxu0  ;;  %v219_v15 = vpop.f32.mrb[2].mxu1 }
  0xe0   :  { %v139_v16 = vpop.f32.mrb[3].mxu0  ;;  %v1836_v17 = vpop.f32.mrb[3].mxu1 }
  0xe1   :  { %v222_v18 = vadd.f32 %v216_v10, %v137_v13  ;;  %v140_v34 = vadd.f32 %v2259_v8, %v139_v16 }
  0xe3   :  { %1988 = vtanh.f32 %v222_v18  ;;  %v1716_v20 = vmul.f32 -1.442695, %v222_v18 }
  0xe5   :  { %1990 = vpow2.f32 %v1716_v20  ;;  %v2300_v56 = vpop.f32.mrb[4].mxu0 }
  0xe6   :  { %v2302_v57 = vpop.f32.mrb[5].mxu0 }
  0xe7   :  { %v2304_v58 = vpop.f32.mrb[6].mxu0 }
  0xe8   :  { %v2306_v59 = vpop.f32.mrb[7].mxu0 }
  0xed   :  { %v1989_v19 = vpop.eup %1988 }
  0xee   :  { %232 = vrot.lane.b32.xlu0 %v1989_v19, %s2159_s21 }
  0xef   :  { %v1991_v21 = vpop.eup %1990 }
  0xf0   :  { %v226_v22 = vadd.f32 1.0, %v1991_v21 }
  0xf2   :  { %1992 = vrcp.f32 %v226_v22 }
  0xfc   :  { %v1993_v23 = vpop.eup %1992 }
  0xfd   :  { %v230_v26 = vmul.f32 0.0, %v1993_v23 }
 0x160   :  { %v233_v24 = vpop.permute.xlu0 %232 }
 0x161   :  { %v235_v25 = vmul.f32 %v1993_v23, %v233_v24  ;;  %v148_v24 = vadd.f32 %v2264_v14, %v2259_v8 }
 0x163   :  { %237 = vrot.lane.b32.xlu0 %v235_v25, %s2159_s21 }
 0x1d5   :  { %v238_v27 = vpop.permute.xlu0 %237 }
 0x1d6   :  { %v240_v28 = vadd.f32 %v238_v27, %v230_v26 }
 0x1d8   :  { %1994 = vtanh.f32 %v240_v28 }
 0x1e2   :  { %v1995_v29 = vpop.eup %1994 }
 0x1e3   :  { %243 = vrot.lane.b32.xlu1 %v1995_v29, %s2159_s21 }
 0x255   :  { %v244_v30 = vpop.permute.xlu1 %243 }
 0x256   :  { %v2269_v31 = vmul.f32 %v1993_v23, %v244_v30 }
 0x258   :  { %v247_v32 = vpack.c.bf16 %v2269_v31, %v2269_v31 }
 0x25a   :  { %249 = vrot.lane.b32.xlu1 %v247_v32, %s2160_s3 }
 0x2cc   :  { %v250_v33 = vpop.permute.xlu1 %249 }
 0x2cd   :  { %1842 = vmatmul.mubr.msk.bf16.vlgmr.msra.gmra.mrb[4].mxu1 %vm89_vm0, %v250_v33 }
 0x2ce   :  { %1854 = vmatpush3.bf16.msra.mxu1 %v2220_v2  ;;  %1857 = vmatprep.mubr.msk.bf16.mxu1 %vm2157_vm1, %v2156_v1 }
 0x2cf   :  { %1855 = vmatprep.subr.bf16.mxu1 %v2156_v1 }
 0x2d2   :  { %1856 = vmatpush3.bf16.msra.mxu1 %v2229_v4 }
 0x2d3   :  { %1869 = vmatprep.subr.bf16.mxu1 %v2156_v1 }
 0x3a0   :  { %v288_v35 = vpop.f32.mrb[4].mxu1 }
 0x3a1   :  { %v294_v36 = vadd.f32 %v288_v35, %v140_v34  ;;  %v1843_v37 = vpop.f32.mrb[5].mxu1 }
 0x3a2   :  { %v291_v38 = vpop.f32.mrb[6].mxu1 }
 0x3a3   :  { %1996 = vtanh.f32 %v294_v36  ;;  %v1844_v39 = vpop.f32.mrb[7].mxu1  ;;  %v1718_v41 = vmul.f32 -1.442695, %v294_v36 }
 0x3a5   :  { %1998 = vpow2.f32 %v1718_v41 }
 0x3ad   :  { %v1997_v40 = vpop.eup %1996 }
 0x3ae   :  { %304 = vrot.lane.b32.xlu0 %v1997_v40, %s2159_s21 }
 0x3af   :  { %v1999_v42 = vpop.eup %1998 }
 0x3b0   :  { %v298_v43 = vadd.f32 1.0, %v1999_v42 }
 0x3b2   :  { %2000 = vrcp.f32 %v298_v43 }
 0x3bc   :  { %v2001_v44 = vpop.eup %2000 }
 0x3bd   :  { %v302_v47 = vmul.f32 %v2001_v44, %v240_v28 }
 0x420   :  { %v305_v45 = vpop.permute.xlu0 %304 }
 0x421   :  { %v307_v46 = vmul.f32 %v2001_v44, %v305_v45  ;;  %v153_v45 = vadd.f32 %v2259_v8, %v2302_v57 }
 0x423   :  { %309 = vrot.lane.b32.xlu1 %v307_v46, %s2159_s21 }
 0x495   :  { %v310_v48 = vpop.permute.xlu1 %309 }
 0x496   :  { %v312_v49 = vadd.f32 %v310_v48, %v302_v47 }
 0x498   :  { %2002 = vtanh.f32 %v312_v49 }
 0x4a2   :  { %v2003_v52 = vpop.eup %2002 }
 0x4a3   :  { %315 = vrot.lane.b32.xlu0 %v2003_v52, %s2159_s21 }
 0x515   :  { %v316_v53 = vpop.permute.xlu0 %315 }
 0x516   :  { %v2295_v54 = vmul.f32 %v2001_v44, %v316_v53 }
 0x518   :  { %v319_v55 = vpack.c.bf16 %v2295_v54, %v2295_v54 }
 0x51a   :  { %321 = vrot.lane.b32.xlu1 %v319_v55, %s2160_s3 }
 0x58c   :  { %v322_v60 = vpop.permute.xlu1 %321 }
 0x58d   :  { %1850 = vmatmul.mubr.msk.bf16.vlgmr.msra.gmra.mrb[8].mxu0 %vm89_vm0, %v322_v60 }
 0x58e   :  { %1862 = vmatpush3.bf16.msra.mxu0 %v2220_v2  ;;  %1865 = vmatprep.mubr.msk.bf16.mxu0 %vm2157_vm1, %v2156_v1 }
 0x58f   :  { %1863 = vmatprep.subr.bf16.mxu0 %v2156_v1 }
 0x592   :  { %1864 = vmatpush3.bf16.msra.mxu0 %v2229_v4 }
 0x593   :  { %1877 = vmatprep.subr.bf16.mxu0 %v2156_v1 }
 0x660   :  { %v360_v62 = vpop.f32.mrb[8].mxu0 }
 0x661   :  { %v366_v63 = vadd.f32 %v360_v62, %v145_v61  ;;  %v1851_v0 = vpop.f32.mrb[9].mxu0 }
 0x662   :  { %v363_v3 = vpop.f32.mrb[10].mxu0 }
 0x663   :  { %2004 = vtanh.f32 %v366_v63  ;;  %v1852_v5 = vpop.f32.mrb[11].mxu0  ;;  %v1720_v10 = vmul.f32 -1.442695, %v366_v63 }
 0x665   :  { %2006 = vpow2.f32 %v1720_v10 }
 0x66d   :  { %v2005_v6 = vpop.eup %2004 }
 0x66e   :  { %376 = vrot.lane.b32.xlu0 %v2005_v6, %s2159_s21 }
 0x66f   :  { %v2007_v11 = vpop.eup %2006 }
 0x670   :  { %v370_v12 = vadd.f32 1.0, %v2007_v11 }
 0x672   :  { %2008 = vrcp.f32 %v370_v12  ;;  %v156_v12 = vadd.f32 %v2259_v8, %v2306_v59 }
 0x67c   :  { %v2009_v13 = vpop.eup %2008 }
 0x67d   :  { %v374_v9 = vmul.f32 %v2009_v13, %v312_v49 }
 0x6e0   :  { %v377_v15 = vpop.permute.xlu0 %376 }
 0x6e1   :  { %v379_v16 = vmul.f32 %v2009_v13, %v377_v15 }
 0x6e3   :  { %381 = vrot.lane.b32.xlu1 %v379_v16, %s2159_s21 }
 0x755   :  { %v382_v17 = vpop.permute.xlu1 %381 }
 0x756   :  { %v384_v18 = vadd.f32 %v382_v17, %v374_v9 }
 0x758   :  { %2010 = vtanh.f32 %v384_v18 }
 0x762   :  { %v2011_v19 = vpop.eup %2010 }
 0x763   :  { %387 = vrot.lane.b32.xlu0 %v2011_v19, %s2159_s21 }
 0x7d5   :  { %v388_v20 = vpop.permute.xlu0 %387 }
 0x7d6   :  { %v2320_v21 = vmul.f32 %v2009_v13, %v388_v20 }
 0x7d8   :  { %v391_v22 = vpack.c.bf16 %v2320_v21, %v2320_v21 }
 0x7da   :  { %393 = vrot.lane.b32.xlu1 %v391_v22, %s2160_s3 }
 0x84c   :  { %v394_v23 = vpop.permute.xlu1 %393 }
 0x84d   :  { %1858 = vmatmul.mubr.msk.bf16.vlgmr.msra.gmra.mrb[8].mxu1 %vm89_vm0, %v394_v23 }
 0x84e   :  { %1870 = vmatpush3.bf16.msra.mxu1 %v2220_v2  ;;  %1873 = vmatprep.mubr.msk.bf16.mxu1 %vm2157_vm1, %v2156_v1 }
 0x84f   :  { %1871 = vmatprep.subr.bf16.mxu1 %v2156_v1 }
 0x852   :  { %1872 = vmatpush3.bf16.msra.mxu1 %v2229_v4 }
 0x853   :  { %1885 = vmatprep.subr.bf16.mxu1 %v2156_v1 }
 0x920   :  { %v432_v25 = vpop.f32.mrb[8].mxu1 }
 0x921   :  { %v438_v26 = vadd.f32 %v432_v25, %v148_v24  ;;  %v1859_v27 = vpop.f32.mrb[9].mxu1 }
 0x922   :  { %v435_v28 = vpop.f32.mrb[10].mxu1 }
 0x923   :  { %2012 = vtanh.f32 %v438_v26  ;;  %v1860_v29 = vpop.f32.mrb[11].mxu1  ;;  %v1722_v32 = vmul.f32 -1.442695, %v438_v26 }
 0x925   :  { %2014 = vpow2.f32 %v1722_v32  ;;  %v161_v32 = vadd.f32 %v2300_v56, %v2259_v8 }
 0x92d   :  { %v2013_v30 = vpop.eup %2012 }
 0x92e   :  { %448 = vrot.lane.b32.xlu0 %v2013_v30, %s2159_s21 }
 0x92f   :  { %v2015_v33 = vpop.eup %2014 }
 0x930   :  { %v442_v34 = vadd.f32 1.0, %v2015_v33 }
 0x932   :  { %2016 = vrcp.f32 %v442_v34 }
 0x93c   :  { %v2017_v35 = vpop.eup %2016 }
 0x93d   :  { %v446_v14 = vmul.f32 %v2017_v35, %v384_v18 }
 0x9a0   :  { %v449_v36 = vpop.permute.xlu0 %448 }
 0x9a1   :  { %v451_v37 = vmul.f32 %v2017_v35, %v449_v36 }
 0x9a3   :  { %453 = vrot.lane.b32.xlu1 %v451_v37, %s2159_s21 }
 0xa15   :  { %v454_v38 = vpop.permute.xlu1 %453 }
 0xa16   :  { %v456_v39 = vadd.f32 %v454_v38, %v446_v14 }
 0xa18   :  { %2018 = vtanh.f32 %v456_v39 }
 0xa22   :  { %v2019_v40 = vpop.eup %2018 }
 0xa23   :  { %459 = vrot.lane.b32.xlu0 %v2019_v40, %s2159_s21 }
 0xa95   :  { %v460_v41 = vpop.permute.xlu0 %459 }
 0xa96   :  { %v2337_v42 = vmul.f32 %v2017_v35, %v460_v41 }
 0xa98   :  { %v463_v43 = vpack.c.bf16 %v2337_v42, %v2337_v42 }
 0xa9a   :  { %465 = vrot.lane.b32.xlu1 %v463_v43, %s2160_s3 }
 0xb0c   :  { %v466_v44 = vpop.permute.xlu1 %465 }
 0xb0d   :  { %1866 = vmatmul.mubr.msk.bf16.vlgmr.msra.gmra.mrb[12].mxu0 %vm89_vm0, %v466_v44 }
 0xb0e   :  { %1878 = vmatpush3.bf16.msra.mxu0 %v2220_v2  ;;  %1881 = vmatprep.mubr.msk.bf16.mxu0 %vm2157_vm1, %v2156_v1 }
 0xb0f   :  { %1879 = vmatprep.subr.bf16.mxu0 %v2156_v1 }
 0xb12   :  { %1880 = vmatpush3.bf16.msra.mxu0 %v2229_v4 }
 0xbe0   :  { %v504_v46 = vpop.f32.mrb[12].mxu0 }
 0xbe1   :  { %v510_v47 = vadd.f32 %v504_v46, %v153_v45  ;;  %v1867_v48 = vpop.f32.mrb[13].mxu0 }
 0xbe2   :  { %v507_v49 = vpop.f32.mrb[14].mxu0 }
 0xbe3   :  { %2020 = vtanh.f32 %v510_v47  ;;  %v1868_v50 = vpop.f32.mrb[15].mxu0  ;;  %v1724_v52 = vmul.f32 -1.442695, %v510_v47  ;;  %v1984_v47 = vld [vmem:[%s2692_s4] sm:$0xff]   ;;  %v756_v49 = vpack.c.bf16 %v2295_v54, %v2269_v31  ;;  %v757_v31 = vpack.c.bf16 %v2337_v42, %v2320_v21 }
 0xbe4   :  { %1893 = vmatprep.subr.bf16.mxu0 %v1984_v47  ;;  %v1985_v50 = vld [vmem:[%s2692_s4 + $0x8] sm:$0xff]   ;;  %v2406_v54 = vld [vmem:[%s2693_s5] sm:$0xff]   ;;  %v164_v42 = vadd.f32 %v2304_v58, %v2259_v8 }
 0xbe5   :  { %2022 = vpow2.f32 %v1724_v52 }
 0xbed   :  { %v2021_v51 = vpop.eup %2020 }
 0xbee   :  { %520 = vrot.lane.b32.xlu0 %v2021_v51, %s2159_s21 }
 0xbef   :  { %v2023_v53 = vpop.eup %2022 }
 0xbf0   :  { %v514_v55 = vadd.f32 1.0, %v2023_v53 }
 0xbf2   :  { %2024 = vrcp.f32 %v514_v55 }
 0xbfc   :  { %v2025_v60 = vpop.eup %2024 }
 0xbfd   :  { %v518_v57 = vmul.f32 %v2025_v60, %v456_v39 }
 0xc60   :  { %v521_v61 = vpop.permute.xlu0 %520 }
 0xc61   :  { %v523_v62 = vmul.f32 %v2025_v60, %v521_v61  ;;  %v2413_v61 = vld [vmem:[%s2693_s5 + $0x8] sm:$0xff]  }
 0xc63   :  { %525 = vrot.lane.b32.xlu1 %v523_v62, %s2159_s21 }
 0xcd5   :  { %v526_v63 = vpop.permute.xlu1 %525 }
 0xcd6   :  { %v528_v0 = vadd.f32 %v526_v63, %v518_v57 }
 0xcd8   :  { %2026 = vtanh.f32 %v528_v0 }
 0xce2   :  { %v2027_v3 = vpop.eup %2026 }
 0xce3   :  { %531 = vrot.lane.b32.xlu0 %v2027_v3, %s2159_s21  ;;  %v2437_v3 = vld [vmem:[%s2694_s6] ss:$0 sm:$0xff] }
 0xd55   :  { %v532_v5 = vpop.permute.xlu0 %531 }
 0xd56   :  { %v2353_v6 = vmul.f32 %v2025_v60, %v532_v5 }
 0xd58   :  { %v535_v10 = vpack.c.bf16 %v2353_v6, %v2353_v6 }
 0xd5a   :  { %537 = vrot.lane.b32.xlu1 %v535_v10, %s2160_s3 }
 0xdcc   :  { %v538_v11 = vpop.permute.xlu1 %537 }
 0xdcd   :  { %1874 = vmatmul.mubr.msk.bf16.vlgmr.msra.gmra.mrb[12].mxu1 %vm89_vm0, %v538_v11 }
 0xdce   :  { %1886 = vmatpush3.bf16.msra.mxu1 %v2220_v2  ;;  %1889 = vmatprep.mubr.msk.bf16.mxu1 %vm2157_vm1, %v2156_v1 }
 0xdcf   :  { %1887 = vmatprep.subr.bf16.mxu1 %v2156_v1 }
 0xdd2   :  { %1888 = vmatpush3.bf16.msra.mxu1 %v2229_v4 }
 0xdd3   :  { %1905 = vmatprep.subr.bf16.mxu1 %v2156_v1 }
 0xea0   :  { %v576_v13 = vpop.f32.mrb[12].mxu1 }
 0xea1   :  { %v582_v15 = vadd.f32 %v576_v13, %v156_v12  ;;  %v1875_v16 = vpop.f32.mrb[13].mxu1 }
 0xea2   :  { %v579_v9 = vpop.f32.mrb[14].mxu1 }
 0xea3   :  { %2028 = vtanh.f32 %v582_v15  ;;  %v1876_v17 = vpop.f32.mrb[15].mxu1  ;;  %v1726_v2 = vmul.f32 -1.442695, %v582_v15 }
 0xea5   :  { %2030 = vpow2.f32 %v1726_v2 }
 0xead   :  { %v2029_v18 = vpop.eup %2028 }
 0xeae   :  { %592 = vrot.lane.b32.xlu0 %v2029_v18, %s2159_s21 }
 0xeaf   :  { %v2031_v19 = vpop.eup %2030 }
 0xeb0   :  { %v586_v20 = vadd.f32 1.0, %v2031_v19 }
 0xeb2   :  { %2032 = vrcp.f32 %v586_v20 }
 0xebc   :  { %v2033_v4 = vpop.eup %2032 }
 0xebd   :  { %v590_v59 = vmul.f32 %v2033_v4, %v528_v0 }
 0xf20   :  { %v593_v22 = vpop.permute.xlu0 %592 }
 0xf21   :  { %v595_v23 = vmul.f32 %v2033_v4, %v593_v22 }
 0xf23   :  { %597 = vrot.lane.b32.xlu1 %v595_v23, %s2159_s21 }
 0xf95   :  { %v598_v24 = vpop.permute.xlu1 %597 }
 0xf96   :  { %v600_v25 = vadd.f32 %v598_v24, %v590_v59 }
 0xf98   :  { %2034 = vtanh.f32 %v600_v25 }
 0xfa2   :  { %v2035_v26 = vpop.eup %2034 }
 0xfa3   :  { %603 = vrot.lane.b32.xlu0 %v2035_v26, %s2159_s21 }
0x1015   :  { %v604_v27 = vpop.permute.xlu0 %603 }
0x1016   :  { %v2370_v28 = vmul.f32 %v2033_v4, %v604_v27 }
0x1018   :  { %v607_v29 = vpack.c.bf16 %v2370_v28, %v2370_v28 }
0x101a   :  { %609 = vrot.lane.b32.xlu1 %v607_v29, %s2160_s3 }
0x108c   :  { %v610_v30 = vpop.permute.xlu1 %609 }
0x108d   :  { %1882 = vmatmul.mubr.msk.bf16.vlgmr.msra.gmra.mrb[16].mxu0 %vm89_vm0, %v610_v30 }
0x108e   :  { %1894 = vmatpush3.bf16.msra.mxu0 %v1984_v47 }
0x108f   :  { %1895 = vmatprep.subr.bf16.mxu0 %v1985_v50 }
0x1092   :  { %1896 = vmatpush3.bf16.msra.mxu0 %v1985_v50 }
0x1093   :  { %1921 = vmatprep.subr.bf16.mxu0 %v2156_v1 }
0x1160   :  { %v648_v33 = vpop.f32.mrb[16].mxu0 }
0x1161   :  { %v654_v34 = vadd.f32 %v648_v33, %v161_v32  ;;  %v1883_v35 = vpop.f32.mrb[17].mxu0 }
0x1162   :  { %v651_v36 = vpop.f32.mrb[18].mxu0 }
0x1163   :  { %2036 = vtanh.f32 %v654_v34  ;;  %v1884_v37 = vpop.f32.mrb[19].mxu0  ;;  %v1728_v38 = vmul.f32 -1.442695, %v654_v34 }
0x1165   :  { %2038 = vpow2.f32 %v1728_v38 }
0x116d   :  { %v2037_v14 = vpop.eup %2036 }
0x116e   :  { %664 = vrot.lane.b32.xlu0 %v2037_v14, %s2159_s21 }
0x116f   :  { %v2039_v39 = vpop.eup %2038 }
0x1170   :  { %v658_v40 = vadd.f32 1.0, %v2039_v39 }
0x1172   :  { %2040 = vrcp.f32 %v658_v40 }
0x117c   :  { %v2041_v41 = vpop.eup %2040 }
0x117d   :  { %v662_v56 = vmul.f32 %v2041_v41, %v600_v25 }
0x11e0   :  { %v665_v43 = vpop.permute.xlu0 %664 }
0x11e1   :  { %v667_v44 = vmul.f32 %v2041_v41, %v665_v43  ;;  %v758_v43 = vpack.c.bf16 %v2370_v28, %v2353_v6 }
0x11e3   :  { %669 = vrot.lane.b32.xlu1 %v667_v44, %s2159_s21 }
0x1255   :  { %v670_v45 = vpop.permute.xlu1 %669 }
0x1256   :  { %v2380_v46 = vadd.f32 %v670_v45, %v662_v56 }
0x1258   :  { %2042 = vtanh.f32 %v2380_v46 }
0x1262   :  { %v2043_v48 = vpop.eup %2042 }
0x1263   :  { %675 = vrot.lane.b32.xlu0 %v2043_v48, %s2159_s21 }
0x1267   :  { %774 = vrot.lane.b32.xlu0 %v756_v49, %s2160_s3 }
0x12d5   :  { %v676_v51 = vpop.permute.xlu0 %675 }
0x12d6   :  { %v2394_v52 = vmul.f32 %v2041_v41, %v676_v51 }
0x12d8   :  { %v679_v53 = vpack.c.bf16 %v2394_v52, %v2394_v52 }
0x12d9   :  { %v775_v55 = vpop.permute.xlu0 %774 }
0x12da   :  { %681 = vrot.lane.b32.xlu1 %v679_v53, %s2160_s3  ;;  %1897 = vmatprep.mubr.msk.bf16.mxu0 %vm89_vm0, %v775_v55 }
0x12de   :  { %776 = vrot.lane.b32.xlu1 %v757_v31, %s2160_s3 }
0x134c   :  { %v682_v60 = vpop.permute.xlu1 %681 }
0x134d   :  { %1890 = vmatmul.mubr.msk.bf16.vlgmr.msra.gmra.mrb[16].mxu1 %vm89_vm0, %v682_v60 }
0x134e   :  { %1906 = vmatpush3.bf16.msra.mxu1 %v2406_v54  ;;  %1909 = vmatprep.mubr.msk.bf16.mxu1 %vm2157_vm1, %v2156_v1 }
0x134f   :  { %1907 = vmatprep.subr.bf16.mxu1 %v2156_v1 }
0x1350   :  { %v777_v21 = vpop.permute.xlu1 %776 }
0x1351   :  { %1898 = vmatmul.mubr.msk.bf16.vlgmr.msra.gmra.mrb[20].mxu0 %vm89_vm0, %v777_v21 }
0x1352   :  { %1908 = vmatpush3.bf16.msra.mxu1 %v2413_v61  ;;  %1922 = vmatpush3.bf16.msra.mxu0 %v2406_v54 }
0x1353   :  { %1913 = vmatprep.subr.bf16.mxu1 %v2156_v1  ;;  %1923 = vmatprep.subr.bf16.mxu0 %v2156_v1 }
0x1355   :  { %1910 = vmatmul.mubr.bf16.vlgmr.msra.gmra.mrb[20].mxu1 %v2158_v7 }
0x1356   :  { %1914 = vmatpush3.bf16.msra.mxu1 %v2406_v54  ;;  %1917 = vmatprep.mubr.msk.bf16.mxu1 %vm2157_vm1, %v2156_v1 }
0x1357   :  { %1915 = vmatprep.subr.bf16.mxu1 %v2156_v1  ;;  %1924 = vmatpush3.bf16.msra.mxu0 %v2413_v61 }
0x1358   :  { %1937 = vmatprep.subr.bf16.mxu0 %v2156_v1 }
0x135a   :  { %1916 = vmatpush3.bf16.msra.mxu1 %v2413_v61 }
0x135b   :  { %1929 = vmatprep.subr.bf16.mxu1 %v2156_v1 }
0x1420   :  { %v720_v62 = vpop.f32.mrb[16].mxu1 }
0x1421   :  { %v726_v7 = vadd.f32 %v720_v62, %v164_v42  ;;  %v1891_v57 = vpop.f32.mrb[17].mxu1 }
0x1422   :  { %v723_v63 = vpop.f32.mrb[18].mxu1 }
0x1423   :  { %v1892_v0 = vpop.f32.mrb[19].mxu1  ;;  %v1730_v27 = vmul.f32 -1.442695, %v726_v7 }
0x1424   :  { %v2439_v5 = vpop.f32.mrb[20].mxu0 }
0x1425   :  { %v840_v10 = vpop.f32.mrb[21].mxu0 }
0x1426   :  { %v841_v11 = vadd.f32 %v2437_v3, %v840_v10  ;;  %v2442_v12 = vpop.f32.mrb[22].mxu0 }
0x1427   :  { %v843_v13 = vpop.f32.mrb[23].mxu0 }
0x1428   :  { %v917_v15 = vpop.f32.mrb[20].mxu1  ;;  %v844_v45 = vadd.f32 %v2437_v3, %v843_v13 }
0x1429   :  { %v923_v8 = vadd.f32 %v917_v15, %v841_v11  ;;  %v1911_v58 = vpop.f32.mrb[21].mxu1 }
0x142a   :  { %v920_v16 = vpop.f32.mrb[22].mxu1 }
0x142b   :  { %2044 = vtanh.f32 %v923_v8  ;;  %v1912_v9 = vpop.f32.mrb[23].mxu1  ;;  %v1740_v18 = vmul.f32 -1.442695, %v923_v8 }
0x142c   :  { %v849_v9 = vadd.f32 %v2439_v5, %v2437_v3 }
0x142d   :  { %2046 = vpow2.f32 %v1740_v18 }
0x1435   :  { %v2045_v17 = vpop.eup %2044 }
0x1436   :  { %933 = vrot.lane.b32.xlu0 %v2045_v17, %s2159_s21 }
0x1437   :  { %v2047_v2 = vpop.eup %2046 }
0x1438   :  { %v927_v19 = vadd.f32 1.0, %v2047_v2 }
0x143a   :  { %2048 = vrcp.f32 %v927_v19 }
0x1444   :  { %v2049_v20 = vpop.eup %2048 }
0x1445   :  { %v931_v23 = vmul.f32 0.0, %v2049_v20 }
0x14a8   :  { %v934_v4 = vpop.permute.xlu0 %933 }
0x14a9   :  { %v936_v22 = vmul.f32 %v2049_v20, %v934_v4 }
0x14ab   :  { %938 = vrot.lane.b32.xlu1 %v936_v22, %s2159_s21 }
0x151d   :  { %v939_v59 = vpop.permute.xlu1 %938 }
0x151e   :  { %v941_v24 = vadd.f32 %v939_v59, %v931_v23 }
0x1520   :  { %2050 = vtanh.f32 %v941_v24 }
0x1521   :  { %2052 = vtanh.f32 %v726_v7 }
0x1522   :  { %2054 = vpow2.f32 %v1730_v27 }
0x152a   :  { %v2051_v25 = vpop.eup %2050 }
0x152b   :  { %944 = vrot.lane.b32.xlu0 %v2051_v25, %s2159_s21  ;;  %v2053_v26 = vpop.eup %2052 }
0x152c   :  { %v2055_v29 = vpop.eup %2054 }
0x152d   :  { %v730_v30 = vadd.f32 1.0, %v2055_v29 }
0x152f   :  { %736 = vrot.lane.b32.xlu0 %v2053_v26, %s2159_s21  ;;  %2056 = vrcp.f32 %v730_v30 }
0x1539   :  { %v2057_v35 = vpop.eup %2056 }
0x153a   :  { %v734_v38 = vmul.f32 %v2057_v35, %v2380_v46 }
0x159d   :  { %v945_v32 = vpop.permute.xlu0 %944 }
0x159e   :  { %v2448_v33 = vmul.f32 %v2049_v20, %v945_v32 }
0x15a0   :  { %v948_v34 = vpack.c.bf16 %v2448_v33, %v2448_v33 }
0x15a1   :  { %v737_v36 = vpop.permute.xlu0 %736 }
0x15a2   :  { %v739_v37 = vmul.f32 %v2057_v35, %v737_v36  ;;  %950 = vrot.lane.b32.xlu1 %v948_v34, %s2160_s3 }
0x15a4   :  { %741 = vrot.lane.b32.xlu0 %v739_v37, %s2159_s21  ;;  %v852_v37 = vadd.f32 %v2442_v12, %v2437_v3 }
0x1614   :  { %v951_v14 = vpop.permute.xlu1 %950 }
0x1615   :  { %1918 = vmatmul.mubr.msk.bf16.vlgmr.msra.gmra.mrb[24].mxu1 %vm89_vm0, %v951_v14 }
0x1616   :  { %v742_v39 = vpop.permute.xlu0 %741  ;;  %1930 = vmatpush3.bf16.msra.mxu1 %v2406_v54  ;;  %1933 = vmatprep.mubr.msk.bf16.mxu1 %vm2157_vm1, %v2156_v1 }
0x1617   :  { %v744_v40 = vadd.f32 %v742_v39, %v734_v38  ;;  %1931 = vmatprep.subr.bf16.mxu1 %v2156_v1 }
0x1619   :  { %2058 = vtanh.f32 %v744_v40 }
0x161a   :  { %1932 = vmatpush3.bf16.msra.mxu1 %v2413_v61 }
0x161b   :  { %1945 = vmatprep.subr.bf16.mxu1 %v2156_v1 }
0x1623   :  { %v2059_v41 = vpop.eup %2058 }
0x1624   :  { %747 = vrot.lane.b32.xlu0 %v2059_v41, %s2159_s21 }
0x1628   :  { %778 = vrot.lane.b32.xlu0 %v758_v43, %s2160_s3 }
0x1696   :  { %v748_v44 = vpop.permute.xlu0 %747 }
0x1697   :  { %v750_v7 = vmul.f32 %v2057_v35, %v748_v44 }
0x1699   :  { %v759_v63 = vpack.c.bf16 %v750_v7, %v2394_v52 }
0x169a   :  { %v779_v56 = vpop.permute.xlu0 %778 }
0x169b   :  { %1901 = vmatprep.mubr.msk.bf16.mxu0 %vm89_vm0, %v779_v56 }
0x16e8   :  { %v989_v46 = vpop.f32.mrb[24].mxu1 }
0x16e9   :  { %v995_v47 = vadd.f32 %v989_v46, %v844_v45  ;;  %v1919_v48 = vpop.f32.mrb[25].mxu1 }
0x16ea   :  { %v992_v49 = vpop.f32.mrb[26].mxu1 }
0x16eb   :  { %2060 = vtanh.f32 %v995_v47  ;;  %v1920_v50 = vpop.f32.mrb[27].mxu1  ;;  %v1742_v53 = vmul.f32 -1.442695, %v995_v47 }
0x16ed   :  { %2062 = vpow2.f32 %v1742_v53 }
0x16f5   :  { %v2061_v51 = vpop.eup %2060 }
0x16f6   :  { %1005 = vrot.lane.b32.xlu1 %v2061_v51, %s2159_s21 }
0x16f7   :  { %v2063_v6 = vpop.eup %2062 }
0x16f8   :  { %v999_v28 = vadd.f32 1.0, %v2063_v6 }
0x16fa   :  { %2064 = vrcp.f32 %v999_v28 }
0x1704   :  { %v2065_v55 = vpop.eup %2064 }
0x1705   :  { %v1003_v21 = vmul.f32 %v2065_v55, %v941_v24 }
0x1768   :  { %v1006_v31 = vpop.permute.xlu1 %1005 }
0x1769   :  { %v1008_v60 = vmul.f32 %v2065_v55, %v1006_v31 }
0x176b   :  { %1010 = vrot.lane.b32.xlu1 %v1008_v60, %s2159_s21 }
0x17dd   :  { %v1011_v42 = vpop.permute.xlu1 %1010 }
0x17de   :  { %v1013_v62 = vadd.f32 %v1011_v42, %v1003_v21 }
0x17e0   :  { %2066 = vtanh.f32 %v1013_v62 }
0x17ea   :  { %v2067_v57 = vpop.eup %2066 }
0x17eb   :  { %1016 = vrot.lane.b32.xlu1 %v2067_v57, %s2159_s21 }
0x17ef   :  { %780 = vrot.lane.b32.xlu1 %v759_v63, %s2160_s3 }
0x185d   :  { %v1017_v0 = vpop.permute.xlu1 %1016 }
0x185e   :  { %v2473_v10 = vmul.f32 %v2065_v55, %v1017_v0 }
0x1860   :  { %v1020_v11 = vpack.c.bf16 %v2473_v10, %v2473_v10 }
0x1861   :  { %v781_v13 = vpop.permute.xlu1 %780 }
0x1862   :  { %1022 = vrot.lane.b32.xlu0 %v1020_v11, %s2160_s3  ;;  %1902 = vmatmul.mubr.msk.bf16.gmra.mrb[24].mxu0 %vm89_vm0, %v781_v13 }
0x1863   :  { %1925 = vmatprep.mubr.msk.bf16.mxu0 %vm2157_vm1, %v2156_v1 }
0x18d4   :  { %v1023_v15 = vpop.permute.xlu0 %1022 }
0x18d5   :  { %1926 = vmatmul.mubr.msk.bf16.vlgmr.msra.gmra.mrb[28].mxu0 %vm89_vm0, %v1023_v15 }
0x18d6   :  { %1938 = vmatpush3.bf16.msra.mxu0 %v2406_v54  ;;  %1941 = vmatprep.mubr.msk.bf16.mxu0 %vm2157_vm1, %v2156_v1 }
0x18d7   :  { %1939 = vmatprep.subr.bf16.mxu0 %v2156_v1 }
0x18da   :  { %1940 = vmatpush3.bf16.msra.mxu0 %v2413_v61 }
0x18db   :  { %1953 = vmatprep.subr.bf16.mxu0 %v2156_v1 }
0x1935   :  { %v2488_v52 = vpop.f32.mrb[24].mxu0 }
0x1936   :  { %v2490_v8 = vpop.f32.mrb[25].mxu0 }
0x1937   :  { %v2492_v58 = vpop.f32.mrb[26].mxu0  ;;  %v857_v31 = vadd.f32 %v2437_v3, %v2490_v8 }
0x1938   :  { %v2494_v16 = vpop.f32.mrb[27].mxu0 }
0x19a8   :  { %v1061_v17 = vpop.f32.mrb[28].mxu0 }
0x19a9   :  { %v1067_v18 = vadd.f32 %v1061_v17, %v849_v9  ;;  %v1927_v2 = vpop.f32.mrb[29].mxu0 }
0x19aa   :  { %v1064_v19 = vpop.f32.mrb[30].mxu0 }
0x19ab   :  { %2068 = vtanh.f32 %v1067_v18  ;;  %v1928_v20 = vpop.f32.mrb[31].mxu0  ;;  %v1744_v22 = vmul.f32 -1.442695, %v1067_v18 }
0x19ad   :  { %2070 = vpow2.f32 %v1744_v22 }
0x19b5   :  { %v2069_v4 = vpop.eup %2068 }
0x19b6   :  { %1077 = vrot.lane.b32.xlu1 %v2069_v4, %s2159_s21 }
0x19b7   :  { %v2071_v23 = vpop.eup %2070 }
0x19b8   :  { %v1071_v59 = vadd.f32 1.0, %v2071_v23  ;;  %v860_v23 = vadd.f32 %v2437_v3, %v2494_v16 }
0x19ba   :  { %2072 = vrcp.f32 %v1071_v59 }
0x19c4   :  { %v2073_v24 = vpop.eup %2072 }
0x19c5   :  { %v1075_v5 = vmul.f32 %v2073_v24, %v1013_v62 }
0x1a28   :  { %v1078_v25 = vpop.permute.xlu1 %1077 }
0x1a29   :  { %v1080_v26 = vmul.f32 %v2073_v24, %v1078_v25 }
0x1a2b   :  { %1082 = vrot.lane.b32.xlu0 %v1080_v26, %s2159_s21 }
0x1a9d   :  { %v1083_v27 = vpop.permute.xlu0 %1082 }
0x1a9e   :  { %v1085_v29 = vadd.f32 %v1083_v27, %v1075_v5 }
0x1aa0   :  { %2074 = vtanh.f32 %v1085_v29 }
0x1aaa   :  { %v2075_v30 = vpop.eup %2074 }
0x1aab   :  { %1088 = vrot.lane.b32.xlu1 %v2075_v30, %s2159_s21 }
0x1b1d   :  { %v1089_v32 = vpop.permute.xlu1 %1088 }
0x1b1e   :  { %v2501_v34 = vmul.f32 %v2073_v24, %v1089_v32 }
0x1b20   :  { %v1092_v35 = vpack.c.bf16 %v2501_v34, %v2501_v34 }
0x1b22   :  { %1094 = vrot.lane.b32.xlu0 %v1092_v35, %s2160_s3 }
0x1b94   :  { %v1095_v36 = vpop.permute.xlu0 %1094 }
0x1b95   :  { %1934 = vmatmul.mubr.msk.bf16.vlgmr.msra.gmra.mrb[28].mxu1 %vm89_vm0, %v1095_v36 }
0x1b96   :  { %1946 = vmatpush3.bf16.msra.mxu1 %v2406_v54  ;;  %1949 = vmatprep.mubr.msk.bf16.mxu1 %vm2157_vm1, %v2156_v1 }
0x1b97   :  { %1947 = vmatprep.subr.bf16.mxu1 %v2156_v1 }
0x1b9a   :  { %1948 = vmatpush3.bf16.msra.mxu1 %v2413_v61 }
0x1b9b   :  { %1961 = vmatprep.subr.bf16.mxu1 %v2156_v1 }
0x1c68   :  { %v1133_v14 = vpop.f32.mrb[28].mxu1 }
0x1c69   :  { %v1139_v38 = vadd.f32 %v1133_v14, %v852_v37  ;;  %v1935_v39 = vpop.f32.mrb[29].mxu1 }
0x1c6a   :  { %v1136_v40 = vpop.f32.mrb[30].mxu1 }
0x1c6b   :  { %2076 = vtanh.f32 %v1139_v38  ;;  %v1936_v41 = vpop.f32.mrb[31].mxu1  ;;  %v1746_v44 = vmul.f32 -1.442695, %v1139_v38 }
0x1c6c   :  { %v865_v41 = vadd.f32 %v2488_v52, %v2437_v3 }
0x1c6d   :  { %2078 = vpow2.f32 %v1746_v44 }
0x1c75   :  { %v2077_v43 = vpop.eup %2076 }
0x1c76   :  { %1149 = vrot.lane.b32.xlu1 %v2077_v43, %s2159_s21 }
0x1c77   :  { %v2079_v56 = vpop.eup %2078 }
0x1c78   :  { %v1143_v45 = vadd.f32 1.0, %v2079_v56 }
0x1c7a   :  { %2080 = vrcp.f32 %v1143_v45 }
0x1c84   :  { %v2081_v46 = vpop.eup %2080 }
0x1c85   :  { %v1147_v12 = vmul.f32 %v2081_v46, %v1085_v29 }
0x1ce8   :  { %v1150_v47 = vpop.permute.xlu1 %1149 }
0x1ce9   :  { %v1152_v48 = vmul.f32 %v2081_v46, %v1150_v47 }
0x1ceb   :  { %1154 = vrot.lane.b32.xlu0 %v1152_v48, %s2159_s21 }
0x1d5d   :  { %v1155_v49 = vpop.permute.xlu0 %1154 }
0x1d5e   :  { %v1157_v50 = vadd.f32 %v1155_v49, %v1147_v12 }
0x1d60   :  { %2082 = vtanh.f32 %v1157_v50 }
0x1d6a   :  { %v2083_v51 = vpop.eup %2082 }
0x1d6b   :  { %1160 = vrot.lane.b32.xlu1 %v2083_v51, %s2159_s21 }
0x1ddd   :  { %v1161_v53 = vpop.permute.xlu1 %1160 }
0x1dde   :  { %v2518_v6 = vmul.f32 %v2081_v46, %v1161_v53 }
0x1de0   :  { %v1164_v28 = vpack.c.bf16 %v2518_v6, %v2518_v6 }
0x1de2   :  { %1166 = vrot.lane.b32.xlu0 %v1164_v28, %s2160_s3 }
0x1e54   :  { %v1167_v55 = vpop.permute.xlu0 %1166 }
0x1e55   :  { %1942 = vmatmul.mubr.msk.bf16.vlgmr.msra.gmra.mrb[32].mxu0 %vm89_vm0, %v1167_v55 }
0x1e56   :  { %1954 = vmatpush3.bf16.msra.mxu0 %v2406_v54  ;;  %1957 = vmatprep.mubr.msk.bf16.mxu0 %vm2157_vm1, %v2156_v1 }
0x1e57   :  { %1955 = vmatprep.subr.bf16.mxu0 %v2156_v1 }
0x1e5a   :  { %1956 = vmatpush3.bf16.msra.mxu0 %v2413_v61 }
0x1f28   :  { %v1205_v60 = vpop.f32.mrb[32].mxu0 }
0x1f29   :  { %v1211_v21 = vadd.f32 %v1205_v60, %v857_v31  ;;  %v1943_v42 = vpop.f32.mrb[33].mxu0 }
0x1f2a   :  { %v1208_v62 = vpop.f32.mrb[34].mxu0 }
0x1f2b   :  { %2084 = vtanh.f32 %v1211_v21  ;;  %v1944_v7 = vpop.f32.mrb[35].mxu0  ;;  %v1748_v63 = vmul.f32 -1.442695, %v1211_v21 }
0x1f2c   :  { %v868_v7 = vadd.f32 %v2492_v58, %v2437_v3 }
0x1f2d   :  { %2086 = vpow2.f32 %v1748_v63 }
0x1f35   :  { %v2085_v57 = vpop.eup %2084 }
0x1f36   :  { %1221 = vrot.lane.b32.xlu1 %v2085_v57, %s2159_s21 }
0x1f37   :  { %v2087_v0 = vpop.eup %2086 }
0x1f38   :  { %v1215_v11 = vadd.f32 1.0, %v2087_v0 }
0x1f3a   :  { %2088 = vrcp.f32 %v1215_v11 }
0x1f44   :  { %v2089_v13 = vpop.eup %2088 }
0x1f45   :  { %v1219_v8 = vmul.f32 %v2089_v13, %v1157_v50 }
0x1fa8   :  { %v1222_v15 = vpop.permute.xlu1 %1221 }
0x1fa9   :  { %v1224_v9 = vmul.f32 %v2089_v13, %v1222_v15 }
0x1fab   :  { %1226 = vrot.lane.b32.xlu0 %v1224_v9, %s2159_s21 }
0x201d   :  { %v1227_v17 = vpop.permute.xlu0 %1226 }
0x201e   :  { %v1229_v18 = vadd.f32 %v1227_v17, %v1219_v8 }
0x2020   :  { %2090 = vtanh.f32 %v1229_v18 }
0x202a   :  { %v2091_v2 = vpop.eup %2090 }
0x202b   :  { %1232 = vrot.lane.b32.xlu1 %v2091_v2, %s2159_s21 }
0x209d   :  { %v1233_v19 = vpop.permute.xlu1 %1232 }
0x209e   :  { %v2534_v20 = vmul.f32 %v2089_v13, %v1233_v19 }
0x20a0   :  { %v1236_v4 = vpack.c.bf16 %v2534_v20, %v2534_v20 }
0x20a2   :  { %1238 = vrot.lane.b32.xlu0 %v1236_v4, %s2160_s3 }
0x2114   :  { %v1239_v22 = vpop.permute.xlu0 %1238 }
0x2115   :  { %1950 = vmatmul.mubr.msk.bf16.vlgmr.msra.gmra.mrb[32].mxu1 %vm89_vm0, %v1239_v22 }
0x2116   :  { %1962 = vmatpush3.bf16.msra.mxu1 %v2406_v54  ;;  %1965 = vmatprep.mubr.msk.bf16.mxu1 %vm2157_vm1, %v2156_v1 }
0x2117   :  { %1963 = vmatprep.subr.bf16.mxu1 %v2156_v1 }
0x211a   :  { %1964 = vmatpush3.bf16.msra.mxu1 %v2413_v61 }
0x21e8   :  { %v1277_v59 = vpop.f32.mrb[32].mxu1 }
0x21e9   :  { %v1283_v24 = vadd.f32 %v1277_v59, %v860_v23  ;;  %v1951_v25 = vpop.f32.mrb[33].mxu1 }
0x21ea   :  { %v1280_v26 = vpop.f32.mrb[34].mxu1 }
0x21eb   :  { %2092 = vtanh.f32 %v1283_v24  ;;  %v1952_v5 = vpop.f32.mrb[35].mxu1  ;;  %v1750_v54 = vmul.f32 -1.442695, %v1283_v24 }
0x21ed   :  { %2094 = vpow2.f32 %v1750_v54 }
0x21f5   :  { %v2093_v27 = vpop.eup %2092 }
0x21f6   :  { %1293 = vrot.lane.b32.xlu1 %v2093_v27, %s2159_s21 }
0x21f7   :  { %v2095_v29 = vpop.eup %2094 }
0x21f8   :  { %v1287_v30 = vadd.f32 1.0, %v2095_v29 }
0x21fa   :  { %2096 = vrcp.f32 %v1287_v30 }
0x2204   :  { %v2097_v1 = vpop.eup %2096 }
0x2205   :  { %v1291_v16 = vmul.f32 %v2097_v1, %v1229_v18 }
0x2268   :  { %v1294_v32 = vpop.permute.xlu1 %1293 }
0x2269   :  { %v1296_v61 = vmul.f32 %v2097_v1, %v1294_v32 }
0x226b   :  { %1298 = vrot.lane.b32.xlu0 %v1296_v61, %s2159_s21 }
0x22dd   :  { %v1299_v35 = vpop.permute.xlu0 %1298 }
0x22de   :  { %v1301_v36 = vadd.f32 %v1299_v35, %v1291_v16 }
0x22e0   :  { %2098 = vtanh.f32 %v1301_v36 }
0x22ea   :  { %v2099_v37 = vpop.eup %2098 }
0x22eb   :  { %1304 = vrot.lane.b32.xlu1 %v2099_v37, %s2159_s21 }
0x235d   :  { %v1305_v14 = vpop.permute.xlu1 %1304 }
0x235e   :  { %v2550_v38 = vmul.f32 %v2097_v1, %v1305_v14 }
0x2360   :  { %v1308_v39 = vpack.c.bf16 %v2550_v38, %v2550_v38 }
0x2362   :  { %1310 = vrot.lane.b32.xlu0 %v1308_v39, %s2160_s3 }
0x23d4   :  { %v1311_v40 = vpop.permute.xlu0 %1310 }
0x23d5   :  { %1958 = vmatmul.mubr.msk.bf16.vlgmr.msra.gmra.mrb[36].mxu0 %vm89_vm0, %v1311_v40 }
0x24a8   :  { %v1349_v43 = vpop.f32.mrb[36].mxu0 }
0x24a9   :  { %v1355_v44 = vadd.f32 %v1349_v43, %v865_v41  ;;  %v1959_v56 = vpop.f32.mrb[37].mxu0 }
0x24aa   :  { %v1352_v45 = vpop.f32.mrb[38].mxu0 }
0x24ab   :  { %2100 = vtanh.f32 %v1355_v44  ;;  %v1960_v46 = vpop.f32.mrb[39].mxu0  ;;  %v1752_v48 = vmul.f32 -1.442695, %v1355_v44 }
0x24ad   :  { %2102 = vpow2.f32 %v1752_v48 }
0x24b5   :  { %v2101_v47 = vpop.eup %2100 }
0x24b6   :  { %1365 = vrot.lane.b32.xlu1 %v2101_v47, %s2159_s21 }
0x24b7   :  { %v2103_v12 = vpop.eup %2102 }
0x24b8   :  { %v1359_v49 = vadd.f32 1.0, %v2103_v12 }
0x24ba   :  { %2104 = vrcp.f32 %v1359_v49 }
0x24c4   :  { %v2105_v50 = vpop.eup %2104 }
0x24c5   :  { %v1363_v52 = vmul.f32 %v2105_v50, %v1301_v36 }
0x2528   :  { %v1366_v51 = vpop.permute.xlu1 %1365 }
0x2529   :  { %v1368_v53 = vmul.f32 %v2105_v50, %v1366_v51 }
0x252b   :  { %1370 = vrot.lane.b32.xlu0 %v1368_v53, %s2159_s21 }
0x259d   :  { %v1371_v28 = vpop.permute.xlu0 %1370 }
0x259e   :  { %v1373_v55 = vadd.f32 %v1371_v28, %v1363_v52 }
0x25a0   :  { %2106 = vtanh.f32 %v1373_v55 }
0x25aa   :  { %v2107_v31 = vpop.eup %2106 }
0x25ab   :  { %1376 = vrot.lane.b32.xlu1 %v2107_v31, %s2159_s21 }
0x261d   :  { %v1377_v60 = vpop.permute.xlu1 %1376 }
0x261e   :  { %v2561_v21 = vmul.f32 %v2105_v50, %v1377_v60 }
0x2620   :  { %v1380_v42 = vpack.c.bf16 %v2561_v21, %v2561_v21 }
0x2622   :  { %1382 = vrot.lane.b32.xlu0 %v1380_v42, %s2160_s3 }
0x2694   :  { %v1383_v62 = vpop.permute.xlu0 %1382 }
0x2695   :  { %1966 = vmatmul.mubr.msk.bf16.vlgmr.msra.gmra.mrb[36].mxu1 %vm89_vm0, %v1383_v62 }
0x2768   :  { %v1421_v57 = vpop.f32.mrb[36].mxu1 }
0x2769   :  { %v1427_v63 = vadd.f32 %v1421_v57, %v868_v7  ;;  %v1967_v0 = vpop.f32.mrb[37].mxu1 }
0x276a   :  { %v1424_v11 = vpop.f32.mrb[38].mxu1 }
0x276b   :  { %2108 = vtanh.f32 %v1427_v63  ;;  %v1968_v13 = vpop.f32.mrb[39].mxu1  ;;  %v1754_v9 = vmul.f32 -1.442695, %v1427_v63 }
0x276d   :  { %2110 = vpow2.f32 %v1754_v9 }
0x2775   :  { %v2109_v15 = vpop.eup %2108 }
0x2776   :  { %1437 = vrot.lane.b32.xlu1 %v2109_v15, %s2159_s21 }
0x2777   :  { %v2111_v8 = vpop.eup %2110 }
0x2778   :  { %v1431_v17 = vadd.f32 1.0, %v2111_v8 }
0x277a   :  { %2112 = vrcp.f32 %v1431_v17 }
0x2784   :  { %v2113_v18 = vpop.eup %2112 }
0x2785   :  { %v1435_v3 = vmul.f32 %v2113_v18, %v1373_v55 }
0x27e8   :  { %v1438_v2 = vpop.permute.xlu1 %1437 }
0x27e9   :  { %v1440_v19 = vmul.f32 %v2113_v18, %v1438_v2 }
0x27eb   :  { %1442 = vrot.lane.b32.xlu0 %v1440_v19, %s2159_s21 }
0x27ef   :  { %1460 = vrot.lane.b32.xlu0 %v2448_v33, %s2160_s3 }
0x27f3   :  { %1468 = vrot.lane.b32.xlu0 %v2534_v20, %s2160_s3 }
0x27f7   :  { %1466 = vrot.lane.b32.xlu0 %v2518_v6, %s2160_s3 }
0x27fb   :  { %1464 = vrot.lane.b32.xlu0 %v2501_v34, %s2160_s3 }
0x285d   :  { %v1443_v58 = vpop.permute.xlu0 %1442 }
0x285e   :  { %v1445_v4 = vadd.f32 %v1443_v58, %v1435_v3 }
0x2860   :  { %2114 = vtanh.f32 %v1445_v4 }
0x2861   :  { %v1461_v22 = vpop.permute.xlu0 %1460 }
0x2862   :  { %v1484_v23 = vsel %vm89_vm0, %v1461_v22, 0.0 }
0x2863   :  { %1485 = vadd.xlane.f32.xlu0 %v1484_v23 }
0x2865   :  { %v1469_v59 = vpop.permute.xlu0 %1468 }
0x2866   :  { %v1496_v24 = vsel %vm89_vm0, %v1469_v59, 0.0  ;;  %v1756_v59 = vld [vmem:[%s2696_s8] ss:$0 sm:$0xff]  ;;  %s2162_s8 = smov [#allocation2]  }
0x2867   :  { %1497 = vadd.xlane.f32.xlu0 %v1496_v24  ;;  %s1695_s15 = sshll.u32 %s2162_s8, 4  ;;  %s1696_s15 = int_to_ptr.vmem [resolvable:$true] %s1695_s15 }
0x2868   :  { %s2132_s16 = scalar_lea.vmem %s1696_s15, 256  ;;  %p2137_p1 = scmp.lt.s32.totalorder %s1696_s15, %s1696_s15 }
0x2869   :  { %v1467_v30 = vpop.permute.xlu0 %1466  ;;  %p2133_p0 = scmp.ne.s32.totalorder %s1696_s15, %s2132_s16  ;;  %p2138_p2 = scmp.lt.s32.totalorder %s2132_s16, %s2132_s16 }
0x286a   :  { %v2115_v25 = vpop.eup %2114  ;;  %v1493_v32 = vsel %vm89_vm0, %v1467_v30, 0.0 }
0x286b   :  { %1448 = vrot.lane.b32.xlu1 %v2115_v25, %s2159_s21  ;;  %p2139_p3 = por %p2138_p2, %p2137_p1 }
0x286d   :  { %v1465_v61 = vpop.permute.xlu0 %1464  ;;  %p2140_p4 = pnand %p2139_p3, %p2133_p0 }
0x286e   :  { %v1490_v16 = vsel %vm89_vm0, %v1465_v61, 0.0 }
0x286f   :  { %1462 = vrot.lane.b32.xlu1 %v2473_v10, %s2160_s3 }
0x2873   :  { %1470 = vrot.lane.b32.xlu1 %v2550_v38, %s2160_s3 }
0x28dd   :  { %v1449_v26 = vpop.permute.xlu1 %1448 }
0x28de   :  { %v1451_v5 = vmul.f32 %v2113_v18, %v1449_v26 }
0x28e0   :  { %1474 = vrot.lane.b32.xlu1 %v1451_v5, %s2160_s3 }
0x28e1   :  { %v1463_v27 = vpop.permute.xlu1 %1462 }
0x28e2   :  { %v1487_v1 = vsel %vm89_vm0, %v1463_v27, 0.0 }
0x28e4   :  { %1472 = vrot.lane.b32.xlu1 %v2561_v21, %s2160_s3 }
0x28e5   :  { %v1471_v54 = vpop.permute.xlu1 %1470 }
0x28e6   :  { %v1499_v29 = vsel %vm89_vm0, %v1471_v54, 0.0 }
0x28e7   :  { %1500 = vadd.xlane.f32.xlu0 %v1499_v29 }
0x28f0   :  { %v1486_v35 = vpop.xlane.xlu0 %1485 }
0x28f1   :  { %v1509_v36 = vmul.f32 0.03125, %v1486_v35 }
0x28f3   :  { %v2594_v14 = vsub.f32 %v2448_v33, %v1509_v36 }
0x28f4   :  { %v1498_v37 = vpop.xlane.xlu0 %1497 }
0x28f5   :  { %v1513_v39 = vmul.f32 0.03125, %v1498_v37  ;;  %v1525_v41 = vmul.f32 %v2594_v14, %v2594_v14 }
0x28f7   :  { %v2597_v40 = vsub.f32 %v2534_v20, %v1513_v39 }
0x28f9   :  { %v1529_v43 = vmul.f32 %v2597_v40, %v2597_v40 }
0x2908   :  { %1488 = vadd.xlane.f32.xlu1 %v1487_v1 }
0x290c   :  { %1494 = vadd.xlane.f32.xlu1 %v1493_v32 }
0x2910   :  { %1491 = vadd.xlane.f32.xlu1 %v1490_v16 }
0x2921   :  { %1541 = vrot.lane.b32.xlu1 %v1525_v41, %s2160_s3 }
0x2925   :  { %1549 = vrot.lane.b32.xlu1 %v1529_v43, %s2160_s3 }
0x2952   :  { %v1475_v44 = vpop.permute.xlu1 %1474 }
0x2953   :  { %v1505_v56 = vsel %vm89_vm0, %v1475_v44, 0.0 }
0x2954   :  { %1506 = vadd.xlane.f32.xlu0 %v1505_v56 }
0x2956   :  { %v1473_v33 = vpop.permute.xlu1 %1472 }
0x2957   :  { %v1502_v45 = vsel %vm89_vm0, %v1473_v33, 0.0 }
0x2958   :  { %1503 = vadd.xlane.f32.xlu0 %v1502_v45 }
0x2974   :  { %v1501_v20 = vpop.xlane.xlu0 %1500 }
0x2975   :  { %v1514_v46 = vmul.f32 0.03125, %v1501_v20 }
0x2977   :  { %v2608_v47 = vsub.f32 %v2550_v38, %v1514_v46 }
0x2979   :  { %v1530_v48 = vmul.f32 %v2608_v47, %v2608_v47 }
0x297b   :  { %1551 = vrot.lane.b32.xlu1 %v1530_v48, %s2160_s3 }
0x2995   :  { %v1489_v12 = vpop.xlane.xlu1 %1488 }
0x2996   :  { %v1510_v49 = vmul.f32 0.03125, %v1489_v12 }
0x2998   :  { %v2614_v50 = vsub.f32 %v2473_v10, %v1510_v49 }
0x2999   :  { %v1495_v51 = vpop.xlane.xlu1 %1494 }
0x299a   :  { %v1512_v53 = vmul.f32 0.03125, %v1495_v51  ;;  %v1526_v52 = vmul.f32 %v2614_v50, %v2614_v50 }
0x299c   :  { %v2619_v28 = vsub.f32 %v2518_v6, %v1512_v53  ;;  %1543 = vrot.lane.b32.xlu0 %v1526_v52, %s2160_s3 }
0x299d   :  { %v1492_v38 = vpop.xlane.xlu1 %1491 }
0x299e   :  { %v1511_v55 = vmul.f32 0.03125, %v1492_v38  ;;  %v1528_v31 = vmul.f32 %v2619_v28, %v2619_v28 }
0x29a0   :  { %v2625_v60 = vsub.f32 %v2501_v34, %v1511_v55  ;;  %1547 = vrot.lane.b32.xlu0 %v1528_v31, %s2160_s3 }
0x29a1   :  { %v1542_v42 = vpop.permute.xlu1 %1541 }
0x29a2   :  { %v1527_v10 = vmul.f32 %v2625_v60, %v2625_v60  ;;  %v1565_v6 = vsel %vm89_vm0, %v1542_v42, 0.0 }
0x29a4   :  { %1545 = vrot.lane.b32.xlu0 %v1527_v10, %s2160_s3 }
0x29a5   :  { %v1550_v62 = vpop.permute.xlu1 %1549 }
0x29a6   :  { %v1577_v7 = vsel %vm89_vm0, %v1550_v62, 0.0 }
0x29c3   :  { %1566 = vadd.xlane.f32.xlu0 %v1565_v6 }
0x29c7   :  { %1578 = vadd.xlane.f32.xlu0 %v1577_v7 }
0x29e1   :  { %v1507_v57 = vpop.xlane.xlu0 %1506 }
0x29e2   :  { %v1516_v63 = vmul.f32 0.03125, %v1507_v57 }
0x29e4   :  { %v2633_v0 = vsub.f32 %v1451_v5, %v1516_v63 }
0x29e5   :  { %v1504_v34 = vpop.xlane.xlu0 %1503 }
0x29e6   :  { %v1515_v11 = vmul.f32 0.03125, %v1504_v34  ;;  %v1532_v13 = vmul.f32 %v2633_v0, %v2633_v0 }
0x29e8   :  { %v2638_v15 = vsub.f32 %v2561_v21, %v1515_v11  ;;  %1555 = vrot.lane.b32.xlu1 %v1532_v13, %s2160_s3  ;;  %v1755_v21 = vld [vmem:[%s2695_s7] ss:$0 sm:$0xff]  ;;  %s2161_s7 = smov 96  }
0x29ea   :  { %v1531_v9 = vmul.f32 %v2638_v15, %v2638_v15 }
0x29ec   :  { %1553 = vrot.lane.b32.xlu1 %v1531_v9, %s2160_s3 }
0x29ed   :  { %v1552_v8 = vpop.permute.xlu1 %1551 }
0x29ee   :  { %v1580_v17 = vsel %vm89_vm0, %v1552_v8, 0.0 }
0x29ef   :  { %1581 = vadd.xlane.f32.xlu0 %v1580_v17 }
0x2a0e   :  { %v1544_v18 = vpop.permute.xlu0 %1543 }
0x2a0f   :  { %v1568_v2 = vsel %vm89_vm0, %v1544_v18, 0.0 }
0x2a10   :  { %1569 = vadd.xlane.f32.xlu1 %v1568_v2 }
0x2a12   :  { %v1548_v19 = vpop.permute.xlu0 %1547 }
0x2a13   :  { %v1574_v3 = vsel %vm89_vm0, %v1548_v19, 0.0 }
0x2a14   :  { %1575 = vadd.xlane.f32.xlu1 %v1574_v3 }
0x2a16   :  { %v1546_v58 = vpop.permute.xlu0 %1545 }
0x2a17   :  { %v1571_v4 = vsel %vm89_vm0, %v1546_v58, 0.0 }
0x2a25   :  { %1627 = vrot.lane.b32.xlu1 %v1755_v21, %s2160_s3 }
0x2a49   :  { %1572 = vadd.xlane.f32.xlu1 %v1571_v4 }
0x2a50   :  { %v1567_v5 = vpop.xlane.xlu0 %1566 }
0x2a51   :  { %v1589_v29 = vmul.f32 0.03125, %v1567_v5 }
0x2a53   :  { %v1597_v61 = vadd.f32 1e-05, %v1589_v29 }
0x2a54   :  { %v1579_v30 = vpop.xlane.xlu0 %1578 }
0x2a55   :  { %v1593_v16 = vmul.f32 0.03125, %v1579_v30 }
0x2a57   :  { %v1601_v37 = vadd.f32 1e-05, %v1593_v16 }
0x2a5a   :  { %v1556_v22 = vpop.permute.xlu1 %1555 }
0x2a5b   :  { %v1586_v23 = vsel %vm89_vm0, %v1556_v22, 0.0 }
0x2a5c   :  { %1587 = vadd.xlane.f32.xlu0 %v1586_v23 }
0x2a5e   :  { %v1554_v24 = vpop.permute.xlu1 %1553 }
0x2a5f   :  { %v1583_v25 = vsel %vm89_vm0, %v1554_v24, 0.0 }
0x2a72   :  { %1644 = vrot.lane.b32.xlu0 %v1756_v59, %s2160_s3 }
0x2a7c   :  { %v1582_v35 = vpop.xlane.xlu0 %1581 }
0x2a7d   :  { %v1594_v39 = vmul.f32 0.03125, %v1582_v35 }
0x2a7f   :  { %v1602_v41 = vadd.f32 1e-05, %v1594_v39 }
0x2a91   :  { %1584 = vadd.xlane.f32.xlu0 %v1583_v25 }
0x2a9d   :  { %v1570_v26 = vpop.xlane.xlu1 %1569 }
0x2a9e   :  { %v1590_v27 = vmul.f32 0.03125, %v1570_v26 }
0x2aa0   :  { %v1598_v1 = vadd.f32 1e-05, %v1590_v27 }
0x2aa1   :  { %v1576_v54 = vpop.xlane.xlu1 %1575 }
0x2aa2   :  { %v1592_v32 = vmul.f32 0.03125, %v1576_v54  ;;  %2116 = vrsqrt.f32 %v1598_v1 }
0x2aa3   :  { %2118 = vrsqrt.f32 %v1597_v61 }
0x2aa4   :  { %v1600_v36 = vadd.f32 1e-05, %v1592_v32 }
0x2aa5   :  { %v1628_v45 = vpop.permute.xlu1 %1627 }
0x2aa6   :  { %2120 = vrsqrt.f32 %v1600_v36 }
0x2aa7   :  { %2122 = vrsqrt.f32 %v1601_v37 }
0x2aa8   :  { %2124 = vrsqrt.f32 %v1602_v41 }
0x2aac   :  { %v2117_v43 = vpop.eup %2116 }
0x2aad   :  { %v2119_v44 = vpop.eup %2118  ;;  %v1614_v56 = vmul.f32 %v2117_v43, %v2614_v50 }
0x2aae   :  { %v1613_v48 = vmul.f32 %v2119_v44, %v2594_v14 }
0x2aaf   :  { %v1631_v51 = vmul.f32 %v1628_v45, %v1614_v56 }
0x2ab0   :  { %v2121_v33 = vpop.eup %2120  ;;  %v1630_v53 = vmul.f32 %v1628_v45, %v1613_v48 }
0x2ab1   :  { %v2123_v12 = vpop.eup %2122  ;;  %v1616_v52 = vmul.f32 %v2121_v33, %v2619_v28 }
0x2ab2   :  { %v1617_v10 = vmul.f32 %v2123_v12, %v2597_v40  ;;  %v2125_v42 = vpop.eup %2124 }
0x2ab3   :  { %v1633_v50 = vmul.f32 %v1628_v45, %v1616_v52  ;;  %v1618_v7 = vmul.f32 %v2125_v42, %v2608_v47 }
0x2ab4   :  { %v1634_v6 = vmul.f32 %v1628_v45, %v1617_v10 }
0x2ab5   :  { %v1635_v28 = vmul.f32 %v1628_v45, %v1618_v7 }
0x2ad6   :  { %v1573_v13 = vpop.xlane.xlu1 %1572 }
0x2ad7   :  { %v1591_v9 = vmul.f32 0.03125, %v1573_v13 }
0x2ad9   :  { %v1599_v8 = vadd.f32 1e-05, %v1591_v9 }
0x2ae9   :  { %v1588_v20 = vpop.xlane.xlu0 %1587 }
0x2aea   :  { %v1596_v46 = vmul.f32 0.03125, %v1588_v20 }
0x2aec   :  { %v1604_v49 = vadd.f32 1e-05, %v1596_v46 }
0x2aed   :  { %v1645_v38 = vpop.permute.xlu0 %1644 }
0x2aee   :  { %2126 = vrsqrt.f32 %v1604_v49  ;;  %v1648_v55 = vadd.f32 %v1645_v38, %v1631_v51  ;;  %v1647_v31 = vadd.f32 %v1645_v38, %v1630_v53  ;;  %v1650_v14 = vadd.f32 %v1645_v38, %v1633_v50 }
0x2aef   :  { %v1651_v62 = vadd.f32 %v1645_v38, %v1634_v6  ;;  %v1652_v57 = vadd.f32 %v1645_v38, %v1635_v28  ;;  %2128 = vrsqrt.f32 %v1599_v8 }
0x2af0   :  { %1660 = vrot.lane.b32.xlu0 %v1648_v55, %s2161_s7  ;;  %1656 = vrot.lane.b32.xlu1 %v1647_v31, %s2160_s3 }
0x2af4   :  { %1664 = vrot.lane.b32.xlu0 %v1650_v14, %s2159_s21  ;;  %1668 = vrot.lane.b32.xlu1 %v1651_v62, %s2160_s3 }
0x2af8   :  { %v2127_v63 = vpop.eup %2126  ;;  %1672 = vrot.lane.b32.xlu1 %v1652_v57, %s2161_s7 }
0x2af9   :  { %v1620_v40 = vmul.f32 %v2127_v63, %v2633_v0  ;;  %v2129_v2 = vpop.eup %2128 }
0x2afa   :  { %v1615_v19 = vmul.f32 %v2129_v2, %v2625_v60 }
0x2afb   :  { %v1637_v34 = vmul.f32 %v1628_v45, %v1620_v40 }
0x2afc   :  { %v1632_v58 = vmul.f32 %v1628_v45, %v1615_v19 }
0x2afd   :  { %v1654_v11 = vadd.f32 %v1645_v38, %v1637_v34 }
0x2afe   :  { %v1649_v22 = vadd.f32 %v1645_v38, %v1632_v58 }
0x2aff   :  { %1676 = vrot.lane.b32.xlu1 %v1654_v11, %s2159_s21 }
0x2b1e   :  { %v1585_v17 = vpop.xlane.xlu0 %1584 }
0x2b1f   :  { %v1595_v47 = vmul.f32 0.03125, %v1585_v17 }
0x2b21   :  { %v1603_v18 = vadd.f32 1e-05, %v1595_v47 }
0x2b23   :  { %2130 = vrsqrt.f32 %v1603_v18 }
0x2b2d   :  { %v2131_v4 = vpop.eup %2130 }
0x2b2e   :  { %v1619_v26 = vmul.f32 %v2131_v4, %v2638_v15 }
0x2b30   :  { %v1636_v60 = vmul.f32 %v1628_v45, %v1619_v26 }
0x2b32   :  { %v1653_v54 = vadd.f32 %v1645_v38, %v1636_v60 }
0x2b62   :  { %v1661_v3 = vpop.permute.xlu0 %1660  ;;  %v1657_v21 = vpop.permute.xlu1 %1656 }
0x2b63   :  { %v1679_v0 = vsel %vm89_vm0, %v1657_v21, %v1661_v3 }
0x2b64   :  { %v1681_v59 = vsel %vm1680_vm2, %v1679_v0, %v1649_v22 }
0x2b66   :  { %v1665_v23 = vpop.permute.xlu0 %1664  ;;  %v1669_v24 = vpop.permute.xlu1 %1668 }
0x2b67   :  { %v1683_v25 = vsel %vm1682_vm3, %v1681_v59, %v1665_v23 }
0x2b68   :  { %1687 = vst [vmem:[#allocation2] sm:$0xff] %v1683_v25 }
0x2b6a   :  { %v1673_v5 = vpop.permute.xlu1 %1672 }
0x2b6b   :  { %v1684_v27 = vsel %vm89_vm0, %v1669_v24, %v1673_v5 }
0x2b6c   :  { %v1685_v29 = vsel %vm1680_vm2, %v1684_v27, %v1653_v54 }
0x2b71   :  { %v1677_v30 = vpop.permute.xlu1 %1676 }
0x2b72   :  { %v1686_v1 = vsel %vm1682_vm3, %v1685_v29, %v1677_v30 }
0x2b73   :  { %1688 = vst [vmem:[#allocation2 + $0x8] sm:$0xff] %v1686_v1 }
0x2b74   :  { %2143 = shalt.err (!%p2140_p4)
}
0x2b75   :  { %s2144_s1 = scalar_lea.hbm %s2697_s9, 256 }
0x2b76   :  { %p2145_p5 = scmp.ne.s32.totalorder %s2697_s9, %s2144_s1  ;;  %p2148_p6 = scmp.lt.u32.totalorder %s2144_s1, %s2697_s9 }
0x2b78   :  { %p2150_p7 = pnand %p2148_p6, %p2145_p5 }
0x2b7a   :  { %2153 = shalt.err (!%p2150_p7)
}
0x2b7b   :  { %1698 = dma.vmem_to_hbm [thread:$0]  %s1696_s15, 256, %s2697_s9, [#allocation3]  }
0x2b7c   :  { %2154 = dma.done.wait [#allocation3], 256  }
0x2b7d   :  { %2155 = vsyncadd [#allocation3], 4294967040 }
0x2b7e   :  { %1702 = vsyncpa [#allocation3], 1 }

</bundles_post_ra>
